<compile_context>
chip_gen: v5e
topology: v5e:2x2
jax: 0.10.0
libtpu: 0.0.40
codegen_flags: <defaults>
</compile_context>

<pallas_src>
import jax
import jax.numpy as jnp
from jax.experimental import pallas as pl
from jax.experimental.pallas import tpu as pltpu

LANE = 128  # TPU lane width; hidden channels are zero-padded to this in the wrapper.


# ------------------------------ kernel -------------------------------------- #

def _gat_layer(x, neg_bias, w_ref, a_src_ref, a_dst_ref, gamma_ref, beta_ref):
    """GATConv(heads=1) -> BatchNorm1d (batch stats) -> ReLU on VMEM-resident values."""
    n = x.shape[0]

    # Feature transform on the MXU (bf16 operands, f32 accumulation).
    h = jnp.dot(x.astype(jnp.bfloat16), w_ref[...].astype(jnp.bfloat16),
                preferred_element_type=jnp.float32)                         # [N, Cp]

    # Attention projections: VPU multiply + XLU lane reduction (no width-1 MXU calls).
    u = jnp.sum(h * a_dst_ref[...], axis=-1, keepdims=True)                 # [N,1] <h_i, a_dst>
    v = jnp.sum(h * a_src_ref[...], axis=-1, keepdims=True)                 # [N,1] <h_j, a_src>

    # e[i,j] = u[i] + v[j] via one rank-2 matmul: [u|1] @ [1|v]^T.  Replaces the two
    # serialized width-1 MXU projections and avoids any sublane->lane transpose of v.
    col = jax.lax.broadcasted_iota(jnp.int32, (n, 2), 1)
    lhs = jnp.where(col == 0, u, 1.0)                                        # [N, 2]
    rhs = jnp.where(col == 0, 1.0, v)                                        # [N, 2]
    e = jax.lax.dot_general(lhs, rhs, (((1,), (1,)), ((), ())),
                            preferred_element_type=jnp.float32)              # [N, N]

    e = jnp.where(e > 0, e, 0.2 * e)        # LeakyReLU(0.2)
    e = e + neg_bias                        # additive edge mask (hoisted, computed once)

    # Row softmax over sources j; masked entries underflow to exactly 0 after exp, and the
    # guaranteed self-loop keeps every row-sum strictly positive.  Exact division (not the
    # approx EUP reciprocal) to stay close to the PyTorch softmax.
    m = jnp.max(e, axis=-1, keepdims=True)
    p = jnp.exp(e - m)
    alpha = p / jnp.sum(p, axis=-1, keepdims=True)

    out = jnp.dot(alpha.astype(jnp.bfloat16), h.astype(jnp.bfloat16),
                  preferred_element_type=jnp.float32)                        # [N, Cp]
    # NOTE: GATConv bias omitted -- it cancels exactly under training-mode BatchNorm.

    # BatchNorm1d over the node axis (training-mode batch statistics), one-pass moments:
    # the two sublane reductions are independent and issue back-to-back.
    inv_n = jnp.float32(1.0 / n)
    s1 = jnp.sum(out, axis=0, keepdims=True)
    s2 = jnp.sum(out * out, axis=0, keepdims=True)
    mu = s1 * inv_n
    var = jnp.maximum(s2 * inv_n - mu * mu, 0.0)
    y = (out - mu) * jax.lax.rsqrt(var + 1e-5) * gamma_ref[...] + beta_ref[...]
    return jnp.maximum(y, 0.0)                                               # ReLU


def _netgat_fused_kernel(x_ref, nbias_ref, pmat_ref,
                         w1, s1, d1, g1, b1,
                         w2, s2, d2, g2, b2,
                         w3, s3, d3, g3, b3,
                         x_out_ref, gpool_ref):
    neg_bias = nbias_ref[...]
    x = _gat_layer(x_ref[...], neg_bias, w1, s1, d1, g1, b1)
    x = _gat_layer(x, neg_bias, w2, s2, d2, g2, b2)
    x = _gat_layer(x, neg_bias, w3, s3, d3, g3, b3)
    x_out_ref[...] = x
    # global_mean_pool fused in: pmat[g, i] = 1/|graph g| if graph(i) == g else 0.
    gpool_ref[...] = jnp.dot(pmat_ref[...], x, preferred_element_type=jnp.float32)


# ------------------------------ wrapper -------------------------------------- #

def _pad_to(a, shape):
    return jnp.pad(a, [(0, t - s) for s, t in zip(a.shape, shape)])


def _bcast_spec(shape):
    # Same (whole-array) block for every grid step -> Pallas keeps it VMEM-resident.
    return pl.BlockSpec(shape, lambda b: (0,) * len(shape))


def net_gat_forward(x, adj, pmat, params):
    """Batched fused forward.

    x    : [B, N, Fin]  node features, B independent graph-batches (forward calls)
    adj  : [B, N, N]    adj[b, i, j] = 1 iff edge j->i (incl. self-loops)
    pmat : [B, G, N]    mean-pool matrix per graph-batch
    Returns (node features [B, N, C], graph pool [B, G, C]).
    """
    B, N, Fin = x.shape
    G = pmat.shape[1]
    C = params[0]["w"].shape[1]
    Cp = ((C + LANE - 1) // LANE) * LANE     # lane-dense hidden width

    # Hoisted additive edge mask: one vadd per layer instead of cmp+select.
    neg_bias = (1.0 - adj) * jnp.float32(-1e30)

    flat = [x, neg_bias, pmat]
    in_specs = [
        pl.BlockSpec((None, N, Fin), lambda b: (b, 0, 0)),
        pl.BlockSpec((None, N, N), lambda b: (b, 0, 0)),
        pl.BlockSpec((None, G, N), lambda b: (b, 0, 0)),
    ]
    for li, layer in enumerate(params):
        fi = layer["w"].shape[0]
        fi_p = fi if li == 0 else Cp         # layer 1 keeps raw Fin; later layers see Cp inputs
        w = _pad_to(layer["w"], (fi_p, Cp))  # zero padding -> padded channels stay exactly 0
        a_src = _pad_to(layer["a_src"], (1, Cp))
        a_dst = _pad_to(layer["a_dst"], (1, Cp))
        gamma = _pad_to(layer["gamma"], (1, Cp))
        beta = _pad_to(layer["beta"], (1, Cp))
        for arr in (w, a_src, a_dst, gamma, beta):
            flat.append(arr)
            in_specs.append(_bcast_spec(arr.shape))

    x_out, gpool = pl.pallas_call(
        _netgat_fused_kernel,
        out_shape=(jax.ShapeDtypeStruct((B, N, Cp), jnp.float32),
                   jax.ShapeDtypeStruct((B, G, Cp), jnp.float32)),
        grid=(B,),
        in_specs=in_specs,
        out_specs=(pl.BlockSpec((None, N, Cp), lambda b: (b, 0, 0)),
                   pl.BlockSpec((None, G, Cp), lambda b: (b, 0, 0))),
        compiler_params=pltpu.CompilerParams(
            dimension_semantics=("parallel",)),   # v7x: shard graph-batches across both TCs
    )(*flat)

    # Strip the lane padding (padded channels are exactly zero).
    return x_out[..., :C], gpool[..., :C]


def init_params(key, in_chnl, hid_chnl, num_heads=1):
    C = hid_chnl * num_heads
    dims = [(in_chnl, C), (C, C), (C, C)]
    params = []
    for fi, fo in dims:
        key, k1, k2, k3, k4, k5 = jax.random.split(key, 6)
        params.append(dict(
            w=jax.random.normal(k1, (fi, fo), jnp.float32) * (1.0 / jnp.sqrt(fi)),
            a_src=jax.random.normal(k2, (1, fo), jnp.float32) * 0.3,          # att_src, heads=1
            a_dst=jax.random.normal(k3, (1, fo), jnp.float32) * 0.3,          # att_dst, heads=1
            gamma=1.0 + 0.1 * jax.random.normal(k4, (1, fo), jnp.float32),    # BN weight
            beta=0.1 * jax.random.normal(k5, (1, fo), jnp.float32),           # BN bias
        ))
    return params


# -------------------------------- main --------------------------------------- #

if __name__ == "__main__":
    B, N, Fin, hid, G, E = 4, 32, 8, 32, 2, 96

    key = jax.random.PRNGKey(0)
    key, kx, ks, kd = jax.random.split(key, 4)
    x = jax.random.normal(kx, (B, N, Fin), jnp.float32)

    # synthetic edge_index per batch element: row 0 = source, row 1 = target
    src = jax.random.randint(ks, (B, E), 0, N)
    dst = jax.random.randint(kd, (B, E), 0, N)

    # densify: adj[b, target, source] = 1, plus self loops (GATConv add_self_loops=True)
    bidx = jnp.repeat(jnp.arange(B), E)
    adj = jnp.zeros((B, N, N), jnp.float32).at[bidx, dst.reshape(-1), src.reshape(-1)].set(1.0)
    adj = jnp.maximum(adj, jnp.eye(N, dtype=jnp.float32)[None])

    # graph assignment inside each batch element: first half graph 0, second half graph 1
    gvec = jnp.concatenate([jnp.zeros(N // 2, jnp.int32), jnp.ones(N - N // 2, jnp.int32)])
    onehot = (gvec[None, :] == jnp.arange(G)[:, None]).astype(jnp.float32)     # [G, N]
    pmat = jnp.tile((onehot / jnp.sum(onehot, axis=1, keepdims=True))[None], (B, 1, 1))

    params = init_params(jax.random.PRNGKey(42), Fin, hid, num_heads=1)

    x_out, gpool = net_gat_forward(x, adj, pmat, params)
    jax.block_until_ready((x_out, gpool))

    assert x_out.shape == (B, N, hid) and gpool.shape == (B, G, hid)
    assert bool(jnp.all(jnp.isfinite(x_out))) and bool(jnp.all(jnp.isfinite(gpool)))
    print("KERNEL_OK")
</pallas_src>

<mosaic_0001>
module attributes {stable_mosaic.version = 11 : i64} {
  func.func @_netgat_fused_kernel(%arg0: i32, %arg1: memref<1x32x8xf32, #tpu.memory_space<vmem>>, %arg2: memref<1x32x32xf32, #tpu.memory_space<vmem>>, %arg3: memref<1x2x32xf32, #tpu.memory_space<vmem>>, %arg4: memref<8x128xf32, #tpu.memory_space<vmem>>, %arg5: memref<1x128xf32, #tpu.memory_space<vmem>>, %arg6: memref<1x128xf32, #tpu.memory_space<vmem>>, %arg7: memref<1x128xf32, #tpu.memory_space<vmem>>, %arg8: memref<1x128xf32, #tpu.memory_space<vmem>>, %arg9: memref<128x128xf32, #tpu.memory_space<vmem>>, %arg10: memref<1x128xf32, #tpu.memory_space<vmem>>, %arg11: memref<1x128xf32, #tpu.memory_space<vmem>>, %arg12: memref<1x128xf32, #tpu.memory_space<vmem>>, %arg13: memref<1x128xf32, #tpu.memory_space<vmem>>, %arg14: memref<128x128xf32, #tpu.memory_space<vmem>>, %arg15: memref<1x128xf32, #tpu.memory_space<vmem>>, %arg16: memref<1x128xf32, #tpu.memory_space<vmem>>, %arg17: memref<1x128xf32, #tpu.memory_space<vmem>>, %arg18: memref<1x128xf32, #tpu.memory_space<vmem>>, %arg19: memref<1x32x128xf32, #tpu.memory_space<vmem>>, %arg20: memref<1x2x128xf32, #tpu.memory_space<vmem>>) attributes {dimension_semantics = [#tpu.dimension_semantics<parallel>], iteration_bounds = array<i64: 4>, scalar_prefetch = 0 : i64, scratch_operands = 0 : i64, tpu.core_type = #tpu.core_type<tc>, window_params = [{transform_indices = @transform_0, window_bounds = array<i64: 1, 32, 8>}, {transform_indices = @transform_1, window_bounds = array<i64: 1, 32, 32>}, {transform_indices = @transform_2, window_bounds = array<i64: 1, 2, 32>}, {pipeline_mode = #tpu.pipeline_mode<synchronous>, transform_indices = @transform_3, window_bounds = array<i64: 8, 128>}, {pipeline_mode = #tpu.pipeline_mode<synchronous>, transform_indices = @transform_4, window_bounds = array<i64: 1, 128>}, {pipeline_mode = #tpu.pipeline_mode<synchronous>, transform_indices = @transform_5, window_bounds = array<i64: 1, 128>}, {pipeline_mode = #tpu.pipeline_mode<synchronous>, transform_indices = @transform_6, window_bounds = array<i64: 1, 128>}, {pipeline_mode = #tpu.pipeline_mode<synchronous>, transform_indices = @transform_7, window_bounds = array<i64: 1, 128>}, {pipeline_mode = #tpu.pipeline_mode<synchronous>, transform_indices = @transform_8, window_bounds = array<i64: 128, 128>}, {pipeline_mode = #tpu.pipeline_mode<synchronous>, transform_indices = @transform_9, window_bounds = array<i64: 1, 128>}, {pipeline_mode = #tpu.pipeline_mode<synchronous>, transform_indices = @transform_10, window_bounds = array<i64: 1, 128>}, {pipeline_mode = #tpu.pipeline_mode<synchronous>, transform_indices = @transform_11, window_bounds = array<i64: 1, 128>}, {pipeline_mode = #tpu.pipeline_mode<synchronous>, transform_indices = @transform_12, window_bounds = array<i64: 1, 128>}, {pipeline_mode = #tpu.pipeline_mode<synchronous>, transform_indices = @transform_13, window_bounds = array<i64: 128, 128>}, {pipeline_mode = #tpu.pipeline_mode<synchronous>, transform_indices = @transform_14, window_bounds = array<i64: 1, 128>}, {pipeline_mode = #tpu.pipeline_mode<synchronous>, transform_indices = @transform_15, window_bounds = array<i64: 1, 128>}, {pipeline_mode = #tpu.pipeline_mode<synchronous>, transform_indices = @transform_16, window_bounds = array<i64: 1, 128>}, {pipeline_mode = #tpu.pipeline_mode<synchronous>, transform_indices = @transform_17, window_bounds = array<i64: 1, 128>}, {transform_indices = @transform_18, window_bounds = array<i64: 1, 32, 128>}, {transform_indices = @transform_19, window_bounds = array<i64: 1, 2, 128>}]} {
    %c0 = arith.constant 0 : index
    %c0_0 = arith.constant 0 : index
    %c0_1 = arith.constant 0 : index
    %0 = vector.load %arg2[%c0, %c0_0, %c0_1] : memref<1x32x32xf32, #tpu.memory_space<vmem>>, vector<1x32x32xf32>
    %1 = vector.shape_cast %0 : vector<1x32x32xf32> to vector<32x32xf32>
    %c0_2 = arith.constant 0 : index
    %c0_3 = arith.constant 0 : index
    %c0_4 = arith.constant 0 : index
    %2 = vector.load %arg1[%c0_2, %c0_3, %c0_4] : memref<1x32x8xf32, #tpu.memory_space<vmem>>, vector<1x32x8xf32>
    %3 = vector.shape_cast %2 : vector<1x32x8xf32> to vector<32x8xf32>
    %4 = arith.truncf %3 : vector<32x8xf32> to vector<32x8xbf16>
    %c0_5 = arith.constant 0 : index
    %c0_6 = arith.constant 0 : index
    %5 = vector.load %arg4[%c0_5, %c0_6] : memref<8x128xf32, #tpu.memory_space<vmem>>, vector<8x128xf32>
    %6 = arith.truncf %5 : vector<8x128xf32> to vector<8x128xbf16>
    %cst = arith.constant dense<0.000000e+00> : vector<32x128xf32>
    %7 = tpu.matmul %4, %6, %cst {dimension_numbers = #tpu.dot_dimension_numbers<[1], [0], [0], [1], [0, 0, 1, 1], [], []>} : vector<32x8xbf16>, vector<8x128xbf16>, vector<32x128xf32> -> vector<32x128xf32>
    %c0_7 = arith.constant 0 : index
    %c0_8 = arith.constant 0 : index
    %8 = vector.load %arg6[%c0_7, %c0_8] : memref<1x128xf32, #tpu.memory_space<vmem>>, vector<1x128xf32>
    %9 = vector.broadcast %8 : vector<1x128xf32> to vector<32x128xf32>
    %10 = arith.mulf %7, %9 : vector<32x128xf32>
    %cst_9 = arith.constant dense<0.000000e+00> : vector<32xf32>
    %11 = vector.multi_reduction <add>, %10, %cst_9 [1] : vector<32x128xf32> to vector<32xf32>
    %12 = vector.shape_cast %11 : vector<32xf32> to vector<32x1xf32>
    %c0_10 = arith.constant 0 : index
    %c0_11 = arith.constant 0 : index
    %13 = vector.load %arg5[%c0_10, %c0_11] : memref<1x128xf32, #tpu.memory_space<vmem>>, vector<1x128xf32>
    %14 = vector.broadcast %13 : vector<1x128xf32> to vector<32x128xf32>
    %15 = arith.mulf %7, %14 : vector<32x128xf32>
    %cst_12 = arith.constant dense<0.000000e+00> : vector<32xf32>
    %16 = vector.multi_reduction <add>, %15, %cst_12 [1] : vector<32x128xf32> to vector<32xf32>
    %17 = vector.shape_cast %16 : vector<32xf32> to vector<32x1xf32>
    %18 = tpu.iota {dimensions = array<i32: 1>} : vector<32x2xi32>
    %c0_i32 = arith.constant 0 : i32
    %19 = vector.broadcast %c0_i32 : i32 to vector<32x2xi32>
    %20 = arith.cmpi eq, %18, %19 : vector<32x2xi32>
    %cst_13 = arith.constant 1.000000e+00 : f32
    %21 = vector.shape_cast %12 : vector<32x1xf32> to vector<32x1xf32>
    %22 = vector.broadcast %21 : vector<32x1xf32> to vector<32x2xf32>
    %23 = vector.broadcast %cst_13 : f32 to vector<32x2xf32>
    %24 = arith.select %20, %22, %23 : vector<32x2xi1>, vector<32x2xf32>
    %c0_i32_14 = arith.constant 0 : i32
    %25 = vector.broadcast %c0_i32_14 : i32 to vector<32x2xi32>
    %26 = arith.cmpi eq, %18, %25 : vector<32x2xi32>
    %cst_15 = arith.constant 1.000000e+00 : f32
    %27 = vector.broadcast %cst_15 : f32 to vector<32x2xf32>
    %28 = vector.shape_cast %17 : vector<32x1xf32> to vector<32x1xf32>
    %29 = vector.broadcast %28 : vector<32x1xf32> to vector<32x2xf32>
    %30 = arith.select %26, %27, %29 : vector<32x2xi1>, vector<32x2xf32>
    %cst_16 = arith.constant dense<0.000000e+00> : vector<32x32xf32>
    %31 = tpu.matmul %24, %30, %cst_16 {dimension_numbers = #tpu.dot_dimension_numbers<[1], [1], [0], [0], [0, 0, 1, 0], [], []>} : vector<32x2xf32>, vector<32x2xf32>, vector<32x32xf32> -> vector<32x32xf32>
    %cst_17 = arith.constant 0.000000e+00 : f32
    %32 = vector.broadcast %cst_17 : f32 to vector<32x32xf32>
    %33 = arith.cmpf ogt, %31, %32 : vector<32x32xf32>
    %cst_18 = arith.constant 2.000000e-01 : f32
    %34 = vector.broadcast %cst_18 : f32 to vector<32x32xf32>
    %35 = arith.mulf %34, %31 : vector<32x32xf32>
    %36 = arith.select %33, %31, %35 : vector<32x32xi1>, vector<32x32xf32>
    %37 = arith.addf %36, %1 : vector<32x32xf32>
    %cst_19 = arith.constant dense<0xFF800000> : vector<32xf32>
    %38 = vector.multi_reduction <maximumf>, %37, %cst_19 [1] : vector<32x32xf32> to vector<32xf32>
    %39 = vector.shape_cast %38 : vector<32xf32> to vector<32x1xf32>
    %40 = vector.broadcast %39 : vector<32x1xf32> to vector<32x32xf32>
    %41 = arith.subf %37, %40 : vector<32x32xf32>
    %42 = math.exp %41 : vector<32x32xf32>
    %cst_20 = arith.constant dense<0.000000e+00> : vector<32xf32>
    %43 = vector.multi_reduction <add>, %42, %cst_20 [1] : vector<32x32xf32> to vector<32xf32>
    %44 = vector.shape_cast %43 : vector<32xf32> to vector<32x1xf32>
    %45 = vector.broadcast %44 : vector<32x1xf32> to vector<32x32xf32>
    %46 = arith.divf %42, %45 : vector<32x32xf32>
    %47 = arith.truncf %46 : vector<32x32xf32> to vector<32x32xbf16>
    %48 = arith.truncf %7 : vector<32x128xf32> to vector<32x128xbf16>
    %cst_21 = arith.constant dense<0.000000e+00> : vector<32x128xf32>
    %49 = tpu.matmul %47, %48, %cst_21 {dimension_numbers = #tpu.dot_dimension_numbers<[1], [0], [0], [1], [0, 0, 1, 1], [], []>} : vector<32x32xbf16>, vector<32x128xbf16>, vector<32x128xf32> -> vector<32x128xf32>
    %cst_22 = arith.constant dense<0.000000e+00> : vector<128xf32>
    %50 = vector.multi_reduction <add>, %49, %cst_22 [0] : vector<32x128xf32> to vector<128xf32>
    %51 = vector.shape_cast %50 : vector<128xf32> to vector<1x128xf32>
    %52 = arith.mulf %49, %49 : vector<32x128xf32>
    %cst_23 = arith.constant dense<0.000000e+00> : vector<128xf32>
    %53 = vector.multi_reduction <add>, %52, %cst_23 [0] : vector<32x128xf32> to vector<128xf32>
    %54 = vector.shape_cast %53 : vector<128xf32> to vector<1x128xf32>
    %cst_24 = arith.constant 3.125000e-02 : f32
    %55 = vector.broadcast %cst_24 : f32 to vector<1x128xf32>
    %56 = arith.mulf %51, %55 : vector<1x128xf32>
    %cst_25 = arith.constant 3.125000e-02 : f32
    %57 = vector.broadcast %cst_25 : f32 to vector<1x128xf32>
    %58 = arith.mulf %54, %57 : vector<1x128xf32>
    %59 = arith.mulf %56, %56 : vector<1x128xf32>
    %60 = arith.subf %58, %59 : vector<1x128xf32>
    %cst_26 = arith.constant 0.000000e+00 : f32
    %61 = vector.broadcast %cst_26 : f32 to vector<1x128xf32>
    %62 = arith.maximumf %60, %61 : vector<1x128xf32>
    %63 = vector.broadcast %56 : vector<1x128xf32> to vector<32x128xf32>
    %64 = arith.subf %49, %63 : vector<32x128xf32>
    %cst_27 = arith.constant 9.99999974E-6 : f32
    %65 = vector.broadcast %cst_27 : f32 to vector<1x128xf32>
    %66 = arith.addf %62, %65 : vector<1x128xf32>
    %67 = math.rsqrt %66 : vector<1x128xf32>
    %68 = vector.broadcast %67 : vector<1x128xf32> to vector<32x128xf32>
    %69 = arith.mulf %64, %68 : vector<32x128xf32>
    %c0_28 = arith.constant 0 : index
    %c0_29 = arith.constant 0 : index
    %70 = vector.load %arg7[%c0_28, %c0_29] : memref<1x128xf32, #tpu.memory_space<vmem>>, vector<1x128xf32>
    %71 = vector.broadcast %70 : vector<1x128xf32> to vector<32x128xf32>
    %72 = arith.mulf %69, %71 : vector<32x128xf32>
    %c0_30 = arith.constant 0 : index
    %c0_31 = arith.constant 0 : index
    %73 = vector.load %arg8[%c0_30, %c0_31] : memref<1x128xf32, #tpu.memory_space<vmem>>, vector<1x128xf32>
    %74 = vector.broadcast %73 : vector<1x128xf32> to vector<32x128xf32>
    %75 = arith.addf %72, %74 : vector<32x128xf32>
    %cst_32 = arith.constant 0.000000e+00 : f32
    %76 = vector.broadcast %cst_32 : f32 to vector<32x128xf32>
    %77 = arith.maximumf %75, %76 : vector<32x128xf32>
    %78 = arith.truncf %77 : vector<32x128xf32> to vector<32x128xbf16>
    %c0_33 = arith.constant 0 : index
    %c0_34 = arith.constant 0 : index
    %79 = vector.load %arg9[%c0_33, %c0_34] : memref<128x128xf32, #tpu.memory_space<vmem>>, vector<128x128xf32>
    %80 = arith.truncf %79 : vector<128x128xf32> to vector<128x128xbf16>
    %cst_35 = arith.constant dense<0.000000e+00> : vector<32x128xf32>
    %81 = tpu.matmul %78, %80, %cst_35 {dimension_numbers = #tpu.dot_dimension_numbers<[1], [0], [0], [1], [0, 0, 1, 1], [], []>} : vector<32x128xbf16>, vector<128x128xbf16>, vector<32x128xf32> -> vector<32x128xf32>
    %c0_36 = arith.constant 0 : index
    %c0_37 = arith.constant 0 : index
    %82 = vector.load %arg11[%c0_36, %c0_37] : memref<1x128xf32, #tpu.memory_space<vmem>>, vector<1x128xf32>
    %83 = vector.broadcast %82 : vector<1x128xf32> to vector<32x128xf32>
    %84 = arith.mulf %81, %83 : vector<32x128xf32>
    %cst_38 = arith.constant dense<0.000000e+00> : vector<32xf32>
    %85 = vector.multi_reduction <add>, %84, %cst_38 [1] : vector<32x128xf32> to vector<32xf32>
    %86 = vector.shape_cast %85 : vector<32xf32> to vector<32x1xf32>
    %c0_39 = arith.constant 0 : index
    %c0_40 = arith.constant 0 : index
    %87 = vector.load %arg10[%c0_39, %c0_40] : memref<1x128xf32, #tpu.memory_space<vmem>>, vector<1x128xf32>
    %88 = vector.broadcast %87 : vector<1x128xf32> to vector<32x128xf32>
    %89 = arith.mulf %81, %88 : vector<32x128xf32>
    %cst_41 = arith.constant dense<0.000000e+00> : vector<32xf32>
    %90 = vector.multi_reduction <add>, %89, %cst_41 [1] : vector<32x128xf32> to vector<32xf32>
    %91 = vector.shape_cast %90 : vector<32xf32> to vector<32x1xf32>
    %92 = tpu.iota {dimensions = array<i32: 1>} : vector<32x2xi32>
    %c0_i32_42 = arith.constant 0 : i32
    %93 = vector.broadcast %c0_i32_42 : i32 to vector<32x2xi32>
    %94 = arith.cmpi eq, %92, %93 : vector<32x2xi32>
    %cst_43 = arith.constant 1.000000e+00 : f32
    %95 = vector.shape_cast %86 : vector<32x1xf32> to vector<32x1xf32>
    %96 = vector.broadcast %95 : vector<32x1xf32> to vector<32x2xf32>
    %97 = vector.broadcast %cst_43 : f32 to vector<32x2xf32>
    %98 = arith.select %94, %96, %97 : vector<32x2xi1>, vector<32x2xf32>
    %c0_i32_44 = arith.constant 0 : i32
    %99 = vector.broadcast %c0_i32_44 : i32 to vector<32x2xi32>
    %100 = arith.cmpi eq, %92, %99 : vector<32x2xi32>
    %cst_45 = arith.constant 1.000000e+00 : f32
    %101 = vector.broadcast %cst_45 : f32 to vector<32x2xf32>
    %102 = vector.shape_cast %91 : vector<32x1xf32> to vector<32x1xf32>
    %103 = vector.broadcast %102 : vector<32x1xf32> to vector<32x2xf32>
    %104 = arith.select %100, %101, %103 : vector<32x2xi1>, vector<32x2xf32>
    %cst_46 = arith.constant dense<0.000000e+00> : vector<32x32xf32>
    %105 = tpu.matmul %98, %104, %cst_46 {dimension_numbers = #tpu.dot_dimension_numbers<[1], [1], [0], [0], [0, 0, 1, 0], [], []>} : vector<32x2xf32>, vector<32x2xf32>, vector<32x32xf32> -> vector<32x32xf32>
    %cst_47 = arith.constant 0.000000e+00 : f32
    %106 = vector.broadcast %cst_47 : f32 to vector<32x32xf32>
    %107 = arith.cmpf ogt, %105, %106 : vector<32x32xf32>
    %cst_48 = arith.constant 2.000000e-01 : f32
    %108 = vector.broadcast %cst_48 : f32 to vector<32x32xf32>
    %109 = arith.mulf %108, %105 : vector<32x32xf32>
    %110 = arith.select %107, %105, %109 : vector<32x32xi1>, vector<32x32xf32>
    %111 = arith.addf %110, %1 : vector<32x32xf32>
    %cst_49 = arith.constant dense<0xFF800000> : vector<32xf32>
    %112 = vector.multi_reduction <maximumf>, %111, %cst_49 [1] : vector<32x32xf32> to vector<32xf32>
    %113 = vector.shape_cast %112 : vector<32xf32> to vector<32x1xf32>
    %114 = vector.broadcast %113 : vector<32x1xf32> to vector<32x32xf32>
    %115 = arith.subf %111, %114 : vector<32x32xf32>
    %116 = math.exp %115 : vector<32x32xf32>
    %cst_50 = arith.constant dense<0.000000e+00> : vector<32xf32>
    %117 = vector.multi_reduction <add>, %116, %cst_50 [1] : vector<32x32xf32> to vector<32xf32>
    %118 = vector.shape_cast %117 : vector<32xf32> to vector<32x1xf32>
    %119 = vector.broadcast %118 : vector<32x1xf32> to vector<32x32xf32>
    %120 = arith.divf %116, %119 : vector<32x32xf32>
    %121 = arith.truncf %120 : vector<32x32xf32> to vector<32x32xbf16>
    %122 = arith.truncf %81 : vector<32x128xf32> to vector<32x128xbf16>
    %cst_51 = arith.constant dense<0.000000e+00> : vector<32x128xf32>
    %123 = tpu.matmul %121, %122, %cst_51 {dimension_numbers = #tpu.dot_dimension_numbers<[1], [0], [0], [1], [0, 0, 1, 1], [], []>} : vector<32x32xbf16>, vector<32x128xbf16>, vector<32x128xf32> -> vector<32x128xf32>
    %cst_52 = arith.constant dense<0.000000e+00> : vector<128xf32>
    %124 = vector.multi_reduction <add>, %123, %cst_52 [0] : vector<32x128xf32> to vector<128xf32>
    %125 = vector.shape_cast %124 : vector<128xf32> to vector<1x128xf32>
    %126 = arith.mulf %123, %123 : vector<32x128xf32>
    %cst_53 = arith.constant dense<0.000000e+00> : vector<128xf32>
    %127 = vector.multi_reduction <add>, %126, %cst_53 [0] : vector<32x128xf32> to vector<128xf32>
    %128 = vector.shape_cast %127 : vector<128xf32> to vector<1x128xf32>
    %cst_54 = arith.constant 3.125000e-02 : f32
    %129 = vector.broadcast %cst_54 : f32 to vector<1x128xf32>
    %130 = arith.mulf %125, %129 : vector<1x128xf32>
    %cst_55 = arith.constant 3.125000e-02 : f32
    %131 = vector.broadcast %cst_55 : f32 to vector<1x128xf32>
    %132 = arith.mulf %128, %131 : vector<1x128xf32>
    %133 = arith.mulf %130, %130 : vector<1x128xf32>
    %134 = arith.subf %132, %133 : vector<1x128xf32>
    %cst_56 = arith.constant 0.000000e+00 : f32
    %135 = vector.broadcast %cst_56 : f32 to vector<1x128xf32>
    %136 = arith.maximumf %134, %135 : vector<1x128xf32>
    %137 = vector.broadcast %130 : vector<1x128xf32> to vector<32x128xf32>
    %138 = arith.subf %123, %137 : vector<32x128xf32>
    %cst_57 = arith.constant 9.99999974E-6 : f32
    %139 = vector.broadcast %cst_57 : f32 to vector<1x128xf32>
    %140 = arith.addf %136, %139 : vector<1x128xf32>
    %141 = math.rsqrt %140 : vector<1x128xf32>
    %142 = vector.broadcast %141 : vector<1x128xf32> to vector<32x128xf32>
    %143 = arith.mulf %138, %142 : vector<32x128xf32>
    %c0_58 = arith.constant 0 : index
    %c0_59 = arith.constant 0 : index
    %144 = vector.load %arg12[%c0_58, %c0_59] : memref<1x128xf32, #tpu.memory_space<vmem>>, vector<1x128xf32>
    %145 = vector.broadcast %144 : vector<1x128xf32> to vector<32x128xf32>
    %146 = arith.mulf %143, %145 : vector<32x128xf32>
    %c0_60 = arith.constant 0 : index
    %c0_61 = arith.constant 0 : index
    %147 = vector.load %arg13[%c0_60, %c0_61] : memref<1x128xf32, #tpu.memory_space<vmem>>, vector<1x128xf32>
    %148 = vector.broadcast %147 : vector<1x128xf32> to vector<32x128xf32>
    %149 = arith.addf %146, %148 : vector<32x128xf32>
    %cst_62 = arith.constant 0.000000e+00 : f32
    %150 = vector.broadcast %cst_62 : f32 to vector<32x128xf32>
    %151 = arith.maximumf %149, %150 : vector<32x128xf32>
    %152 = arith.truncf %151 : vector<32x128xf32> to vector<32x128xbf16>
    %c0_63 = arith.constant 0 : index
    %c0_64 = arith.constant 0 : index
    %153 = vector.load %arg14[%c0_63, %c0_64] : memref<128x128xf32, #tpu.memory_space<vmem>>, vector<128x128xf32>
    %154 = arith.truncf %153 : vector<128x128xf32> to vector<128x128xbf16>
    %cst_65 = arith.constant dense<0.000000e+00> : vector<32x128xf32>
    %155 = tpu.matmul %152, %154, %cst_65 {dimension_numbers = #tpu.dot_dimension_numbers<[1], [0], [0], [1], [0, 0, 1, 1], [], []>} : vector<32x128xbf16>, vector<128x128xbf16>, vector<32x128xf32> -> vector<32x128xf32>
    %c0_66 = arith.constant 0 : index
    %c0_67 = arith.constant 0 : index
    %156 = vector.load %arg16[%c0_66, %c0_67] : memref<1x128xf32, #tpu.memory_space<vmem>>, vector<1x128xf32>
    %157 = vector.broadcast %156 : vector<1x128xf32> to vector<32x128xf32>
    %158 = arith.mulf %155, %157 : vector<32x128xf32>
    %cst_68 = arith.constant dense<0.000000e+00> : vector<32xf32>
    %159 = vector.multi_reduction <add>, %158, %cst_68 [1] : vector<32x128xf32> to vector<32xf32>
    %160 = vector.shape_cast %159 : vector<32xf32> to vector<32x1xf32>
    %c0_69 = arith.constant 0 : index
    %c0_70 = arith.constant 0 : index
    %161 = vector.load %arg15[%c0_69, %c0_70] : memref<1x128xf32, #tpu.memory_space<vmem>>, vector<1x128xf32>
    %162 = vector.broadcast %161 : vector<1x128xf32> to vector<32x128xf32>
    %163 = arith.mulf %155, %162 : vector<32x128xf32>
    %cst_71 = arith.constant dense<0.000000e+00> : vector<32xf32>
    %164 = vector.multi_reduction <add>, %163, %cst_71 [1] : vector<32x128xf32> to vector<32xf32>
    %165 = vector.shape_cast %164 : vector<32xf32> to vector<32x1xf32>
    %166 = tpu.iota {dimensions = array<i32: 1>} : vector<32x2xi32>
    %c0_i32_72 = arith.constant 0 : i32
    %167 = vector.broadcast %c0_i32_72 : i32 to vector<32x2xi32>
    %168 = arith.cmpi eq, %166, %167 : vector<32x2xi32>
    %cst_73 = arith.constant 1.000000e+00 : f32
    %169 = vector.shape_cast %160 : vector<32x1xf32> to vector<32x1xf32>
    %170 = vector.broadcast %169 : vector<32x1xf32> to vector<32x2xf32>
    %171 = vector.broadcast %cst_73 : f32 to vector<32x2xf32>
    %172 = arith.select %168, %170, %171 : vector<32x2xi1>, vector<32x2xf32>
    %c0_i32_74 = arith.constant 0 : i32
    %173 = vector.broadcast %c0_i32_74 : i32 to vector<32x2xi32>
    %174 = arith.cmpi eq, %166, %173 : vector<32x2xi32>
    %cst_75 = arith.constant 1.000000e+00 : f32
    %175 = vector.broadcast %cst_75 : f32 to vector<32x2xf32>
    %176 = vector.shape_cast %165 : vector<32x1xf32> to vector<32x1xf32>
    %177 = vector.broadcast %176 : vector<32x1xf32> to vector<32x2xf32>
    %178 = arith.select %174, %175, %177 : vector<32x2xi1>, vector<32x2xf32>
    %cst_76 = arith.constant dense<0.000000e+00> : vector<32x32xf32>
    %179 = tpu.matmul %172, %178, %cst_76 {dimension_numbers = #tpu.dot_dimension_numbers<[1], [1], [0], [0], [0, 0, 1, 0], [], []>} : vector<32x2xf32>, vector<32x2xf32>, vector<32x32xf32> -> vector<32x32xf32>
    %cst_77 = arith.constant 0.000000e+00 : f32
    %180 = vector.broadcast %cst_77 : f32 to vector<32x32xf32>
    %181 = arith.cmpf ogt, %179, %180 : vector<32x32xf32>
    %cst_78 = arith.constant 2.000000e-01 : f32
    %182 = vector.broadcast %cst_78 : f32 to vector<32x32xf32>
    %183 = arith.mulf %182, %179 : vector<32x32xf32>
    %184 = arith.select %181, %179, %183 : vector<32x32xi1>, vector<32x32xf32>
    %185 = arith.addf %184, %1 : vector<32x32xf32>
    %cst_79 = arith.constant dense<0xFF800000> : vector<32xf32>
    %186 = vector.multi_reduction <maximumf>, %185, %cst_79 [1] : vector<32x32xf32> to vector<32xf32>
    %187 = vector.shape_cast %186 : vector<32xf32> to vector<32x1xf32>
    %188 = vector.broadcast %187 : vector<32x1xf32> to vector<32x32xf32>
    %189 = arith.subf %185, %188 : vector<32x32xf32>
    %190 = math.exp %189 : vector<32x32xf32>
    %cst_80 = arith.constant dense<0.000000e+00> : vector<32xf32>
    %191 = vector.multi_reduction <add>, %190, %cst_80 [1] : vector<32x32xf32> to vector<32xf32>
    %192 = vector.shape_cast %191 : vector<32xf32> to vector<32x1xf32>
    %193 = vector.broadcast %192 : vector<32x1xf32> to vector<32x32xf32>
    %194 = arith.divf %190, %193 : vector<32x32xf32>
    %195 = arith.truncf %194 : vector<32x32xf32> to vector<32x32xbf16>
    %196 = arith.truncf %155 : vector<32x128xf32> to vector<32x128xbf16>
    %cst_81 = arith.constant dense<0.000000e+00> : vector<32x128xf32>
    %197 = tpu.matmul %195, %196, %cst_81 {dimension_numbers = #tpu.dot_dimension_numbers<[1], [0], [0], [1], [0, 0, 1, 1], [], []>} : vector<32x32xbf16>, vector<32x128xbf16>, vector<32x128xf32> -> vector<32x128xf32>
    %cst_82 = arith.constant dense<0.000000e+00> : vector<128xf32>
    %198 = vector.multi_reduction <add>, %197, %cst_82 [0] : vector<32x128xf32> to vector<128xf32>
    %199 = vector.shape_cast %198 : vector<128xf32> to vector<1x128xf32>
    %200 = arith.mulf %197, %197 : vector<32x128xf32>
    %cst_83 = arith.constant dense<0.000000e+00> : vector<128xf32>
    %201 = vector.multi_reduction <add>, %200, %cst_83 [0] : vector<32x128xf32> to vector<128xf32>
    %202 = vector.shape_cast %201 : vector<128xf32> to vector<1x128xf32>
    %cst_84 = arith.constant 3.125000e-02 : f32
    %203 = vector.broadcast %cst_84 : f32 to vector<1x128xf32>
    %204 = arith.mulf %199, %203 : vector<1x128xf32>
    %cst_85 = arith.constant 3.125000e-02 : f32
    %205 = vector.broadcast %cst_85 : f32 to vector<1x128xf32>
    %206 = arith.mulf %202, %205 : vector<1x128xf32>
    %207 = arith.mulf %204, %204 : vector<1x128xf32>
    %208 = arith.subf %206, %207 : vector<1x128xf32>
    %cst_86 = arith.constant 0.000000e+00 : f32
    %209 = vector.broadcast %cst_86 : f32 to vector<1x128xf32>
    %210 = arith.maximumf %208, %209 : vector<1x128xf32>
    %211 = vector.broadcast %204 : vector<1x128xf32> to vector<32x128xf32>
    %212 = arith.subf %197, %211 : vector<32x128xf32>
    %cst_87 = arith.constant 9.99999974E-6 : f32
    %213 = vector.broadcast %cst_87 : f32 to vector<1x128xf32>
    %214 = arith.addf %210, %213 : vector<1x128xf32>
    %215 = math.rsqrt %214 : vector<1x128xf32>
    %216 = vector.broadcast %215 : vector<1x128xf32> to vector<32x128xf32>
    %217 = arith.mulf %212, %216 : vector<32x128xf32>
    %c0_88 = arith.constant 0 : index
    %c0_89 = arith.constant 0 : index
    %218 = vector.load %arg17[%c0_88, %c0_89] : memref<1x128xf32, #tpu.memory_space<vmem>>, vector<1x128xf32>
    %219 = vector.broadcast %218 : vector<1x128xf32> to vector<32x128xf32>
    %220 = arith.mulf %217, %219 : vector<32x128xf32>
    %c0_90 = arith.constant 0 : index
    %c0_91 = arith.constant 0 : index
    %221 = vector.load %arg18[%c0_90, %c0_91] : memref<1x128xf32, #tpu.memory_space<vmem>>, vector<1x128xf32>
    %222 = vector.broadcast %221 : vector<1x128xf32> to vector<32x128xf32>
    %223 = arith.addf %220, %222 : vector<32x128xf32>
    %cst_92 = arith.constant 0.000000e+00 : f32
    %224 = vector.broadcast %cst_92 : f32 to vector<32x128xf32>
    %225 = arith.maximumf %223, %224 : vector<32x128xf32>
    %c0_93 = arith.constant 0 : index
    %c0_94 = arith.constant 0 : index
    %c0_95 = arith.constant 0 : index
    %226 = vector.load %arg19[%c0_93, %c0_94, %c0_95] : memref<1x32x128xf32, #tpu.memory_space<vmem>>, vector<1x32x128xf32>
    %227 = vector.shape_cast %226 : vector<1x32x128xf32> to vector<32x128xf32>
    %228 = vector.shape_cast %225 : vector<32x128xf32> to vector<1x32x128xf32>
    tpu.vector_store %arg19[%c0_93, %c0_94, %c0_95], %228 {strides = array<i32>} : memref<1x32x128xf32, #tpu.memory_space<vmem>>, vector<1x32x128xf32>,
    %c0_96 = arith.constant 0 : index
    %c0_97 = arith.constant 0 : index
    %c0_98 = arith.constant 0 : index
    %229 = vector.load %arg3[%c0_96, %c0_97, %c0_98] : memref<1x2x32xf32, #tpu.memory_space<vmem>>, vector<1x2x32xf32>
    %230 = vector.shape_cast %229 : vector<1x2x32xf32> to vector<2x32xf32>
    %cst_99 = arith.constant dense<0.000000e+00> : vector<2x128xf32>
    %231 = tpu.matmul %230, %225, %cst_99 {dimension_numbers = #tpu.dot_dimension_numbers<[1], [0], [0], [1], [0, 0, 1, 1], [], []>} : vector<2x32xf32>, vector<32x128xf32>, vector<2x128xf32> -> vector<2x128xf32>
    %c0_100 = arith.constant 0 : index
    %c0_101 = arith.constant 0 : index
    %c0_102 = arith.constant 0 : index
    %232 = vector.load %arg20[%c0_100, %c0_101, %c0_102] : memref<1x2x128xf32, #tpu.memory_space<vmem>>, vector<1x2x128xf32>
    %233 = vector.shape_cast %232 : vector<1x2x128xf32> to vector<2x128xf32>
    %234 = vector.shape_cast %231 : vector<2x128xf32> to vector<1x2x128xf32>
    tpu.vector_store %arg20[%c0_100, %c0_101, %c0_102], %234 {strides = array<i32>} : memref<1x2x128xf32, #tpu.memory_space<vmem>>, vector<1x2x128xf32>,
    return
  }
  func.func @transform_0(%arg0: i32) -> (i32, i32, i32) {
    %c0_i32 = arith.constant 0 : i32
    %c0_i32_0 = arith.constant 0 : i32
    %c0_i32_1 = arith.constant 0 : i32
    return %arg0, %c0_i32, %c0_i32_0 : i32, i32, i32
  }
  func.func @transform_1(%arg0: i32) -> (i32, i32, i32) {
    %c0_i32 = arith.constant 0 : i32
    %c0_i32_0 = arith.constant 0 : i32
    %c0_i32_1 = arith.constant 0 : i32
    return %arg0, %c0_i32, %c0_i32_0 : i32, i32, i32
  }
  func.func @transform_2(%arg0: i32) -> (i32, i32, i32) {
    %c0_i32 = arith.constant 0 : i32
    %c0_i32_0 = arith.constant 0 : i32
    %c0_i32_1 = arith.constant 0 : i32
    return %arg0, %c0_i32, %c0_i32_0 : i32, i32, i32
  }
  func.func @transform_3(%arg0: i32) -> (i32, i32) {
    %c0_i32 = arith.constant 0 : i32
    %c0_i32_0 = arith.constant 0 : i32
    %c0_i32_1 = arith.constant 0 : i32
    return %c0_i32, %c0_i32_0 : i32, i32
  }
  func.func @transform_4(%arg0: i32) -> (i32, i32) {
    %c0_i32 = arith.constant 0 : i32
    %c0_i32_0 = arith.constant 0 : i32
    %c0_i32_1 = arith.constant 0 : i32
    return %c0_i32, %c0_i32_0 : i32, i32
  }
  func.func @transform_5(%arg0: i32) -> (i32, i32) {
    %c0_i32 = arith.constant 0 : i32
    %c0_i32_0 = arith.constant 0 : i32
    %c0_i32_1 = arith.constant 0 : i32
    return %c0_i32, %c0_i32_0 : i32, i32
  }
  func.func @transform_6(%arg0: i32) -> (i32, i32) {
    %c0_i32 = arith.constant 0 : i32
    %c0_i32_0 = arith.constant 0 : i32
    %c0_i32_1 = arith.constant 0 : i32
    return %c0_i32, %c0_i32_0 : i32, i32
  }
  func.func @transform_7(%arg0: i32) -> (i32, i32) {
    %c0_i32 = arith.constant 0 : i32
    %c0_i32_0 = arith.constant 0 : i32
    %c0_i32_1 = arith.constant 0 : i32
    return %c0_i32, %c0_i32_0 : i32, i32
  }
  func.func @transform_8(%arg0: i32) -> (i32, i32) {
    %c0_i32 = arith.constant 0 : i32
    %c0_i32_0 = arith.constant 0 : i32
    %c0_i32_1 = arith.constant 0 : i32
    return %c0_i32, %c0_i32_0 : i32, i32
  }
  func.func @transform_9(%arg0: i32) -> (i32, i32) {
    %c0_i32 = arith.constant 0 : i32
    %c0_i32_0 = arith.constant 0 : i32
    %c0_i32_1 = arith.constant 0 : i32
    return %c0_i32, %c0_i32_0 : i32, i32
  }
  func.func @transform_10(%arg0: i32) -> (i32, i32) {
    %c0_i32 = arith.constant 0 : i32
    %c0_i32_0 = arith.constant 0 : i32
    %c0_i32_1 = arith.constant 0 : i32
    return %c0_i32, %c0_i32_0 : i32, i32
  }
  func.func @transform_11(%arg0: i32) -> (i32, i32) {
    %c0_i32 = arith.constant 0 : i32
    %c0_i32_0 = arith.constant 0 : i32
    %c0_i32_1 = arith.constant 0 : i32
    return %c0_i32, %c0_i32_0 : i32, i32
  }
  func.func @transform_12(%arg0: i32) -> (i32, i32) {
    %c0_i32 = arith.constant 0 : i32
    %c0_i32_0 = arith.constant 0 : i32
    %c0_i32_1 = arith.constant 0 : i32
    return %c0_i32, %c0_i32_0 : i32, i32
  }
  func.func @transform_13(%arg0: i32) -> (i32, i32) {
    %c0_i32 = arith.constant 0 : i32
    %c0_i32_0 = arith.constant 0 : i32
    %c0_i32_1 = arith.constant 0 : i32
    return %c0_i32, %c0_i32_0 : i32, i32
  }
  func.func @transform_14(%arg0: i32) -> (i32, i32) {
    %c0_i32 = arith.constant 0 : i32
    %c0_i32_0 = arith.constant 0 : i32
    %c0_i32_1 = arith.constant 0 : i32
    return %c0_i32, %c0_i32_0 : i32, i32
  }
  func.func @transform_15(%arg0: i32) -> (i32, i32) {
    %c0_i32 = arith.constant 0 : i32
    %c0_i32_0 = arith.constant 0 : i32
    %c0_i32_1 = arith.constant 0 : i32
    return %c0_i32, %c0_i32_0 : i32, i32
  }
  func.func @transform_16(%arg0: i32) -> (i32, i32) {
    %c0_i32 = arith.constant 0 : i32
    %c0_i32_0 = arith.constant 0 : i32
    %c0_i32_1 = arith.constant 0 : i32
    return %c0_i32, %c0_i32_0 : i32, i32
  }
  func.func @transform_17(%arg0: i32) -> (i32, i32) {
    %c0_i32 = arith.constant 0 : i32
    %c0_i32_0 = arith.constant 0 : i32
    %c0_i32_1 = arith.constant 0 : i32
    return %c0_i32, %c0_i32_0 : i32, i32
  }
  func.func @transform_18(%arg0: i32) -> (i32, i32, i32) {
    %c0_i32 = arith.constant 0 : i32
    %c0_i32_0 = arith.constant 0 : i32
    %c0_i32_1 = arith.constant 0 : i32
    return %arg0, %c0_i32, %c0_i32_0 : i32, i32, i32
  }
  func.func @transform_19(%arg0: i32) -> (i32, i32, i32) {
    %c0_i32 = arith.constant 0 : i32
    %c0_i32_0 = arith.constant 0 : i32
    %c0_i32_1 = arith.constant 0 : i32
    return %arg0, %c0_i32, %c0_i32_0 : i32, i32, i32
  }
}

</mosaic_0001>

<bundles_post_ra>
// kernel: tpu_custom_call.1
= control target key start
LH: loop header
LB: loop body
LE: loop exit
PB: predicated region body
PF: predicated region fallthrough
CT: control target
= control target key end

     0   :  { %s2801_s0 = inlined_call_operand.vmem [shape: f32[4,32,8], index: 0, kind: input, shape index: {}]   ;;  %s2802_s1 = inlined_call_operand.vmem [shape: f32[4,32,32], index: 1, kind: input, shape index: {}]   ;;  %s2803_s2 = inlined_call_operand.vmem [shape: f32[4,2,32], index: 2, kind: input, shape index: {}]   ;;  %s2804_s3 = inlined_call_operand.vmem [shape: f32[8,128], index: 3, kind: input, shape index: {}]   ;;  %s2805_s4 = inlined_call_operand.vmem [shape: f32[1,128], index: 4, kind: input, shape index: {}]   ;;  %s2806_s5 = inlined_call_operand.vmem [shape: f32[1,128], index: 5, kind: input, shape index: {}]   ;;  %s2807_s6 = inlined_call_operand.vmem [shape: f32[1,128], index: 6, kind: input, shape index: {}]   ;;  %s2808_s7 = inlined_call_operand.vmem [shape: f32[1,128], index: 7, kind: input, shape index: {}]   ;;  %s2809_s8 = inlined_call_operand.hbm [shape: f32[128,128], index: 8, kind: input, shape index: {}]   ;;  %s2810_s9 = inlined_call_operand.vmem [shape: f32[1,128], index: 9, kind: input, shape index: {}]   ;;  %s2811_s10 = inlined_call_operand.vmem [shape: f32[1,128], index: 10, kind: input, shape index: {}]   ;;  %s2812_s11 = inlined_call_operand.vmem [shape: f32[1,128], index: 11, kind: input, shape index: {}]   ;;  %s2813_s12 = inlined_call_operand.vmem [shape: f32[1,128], index: 12, kind: input, shape index: {}]   ;;  %s2814_s13 = inlined_call_operand.hbm [shape: f32[128,128], index: 13, kind: input, shape index: {}]   ;;  %s2815_s14 = inlined_call_operand.vmem [shape: f32[1,128], index: 14, kind: input, shape index: {}]   ;;  %s2816_s15 = inlined_call_operand.vmem [shape: f32[1,128], index: 15, kind: input, shape index: {}]   ;;  %s2817_s16 = inlined_call_operand.vmem [shape: f32[1,128], index: 16, kind: input, shape index: {}]   ;;  %s2818_s17 = inlined_call_operand.vmem [shape: f32[1,128], index: 17, kind: input, shape index: {}]   ;;  %s2819_s18 = inlined_call_operand.hbm [shape: f32[4,32,128], index: 18, kind: output, shape index: {0}]   ;;  %s2820_s19 = inlined_call_operand.hbm [shape: f32[4,2,128], index: 19, kind: output, shape index: {1}]  }
   0x1   :  { %2827 = sst [smem:[#allocation20_spill]] %s2801_s0 }
   0x2   :  { %2828 = sst [smem:[#allocation21_spill]] %s2802_s1 }
   0x3   :  { %2829 = sst [smem:[#allocation22_spill]] %s2803_s2 }
   0x4   :  { %2830 = sst [smem:[#allocation23_spill]] %s2804_s3 }
   0x5   :  { %2831 = sst [smem:[#allocation24_spill]] %s2805_s4 }
   0x6   :  { %2832 = sst [smem:[#allocation25_spill]] %s2806_s5 }
   0x7   :  { %2833 = sst [smem:[#allocation26_spill]] %s2807_s6 }
   0x8   :  { %2834 = sst [smem:[#allocation27_spill]] %s2808_s7 }
   0x9   :  { %2835 = sst [smem:[#allocation28_spill]] %s2809_s8 }
   0xa   :  { %25 = vsyncpa [#allocation3], 0 }
   0xb   :  { %26 = vsyncpa [#allocation6], 0 }
   0xc   :  { %27 = vsyncpa [#allocation4], 0 }
   0xd   :  { %29 = vsyncpa [#allocation4 + $0x1], 0 }
   0xe   :  { %30 = vsyncpa [#allocation9], 0 }
   0xf   :  { %32 = vsyncpa [#allocation9 + $0x1], 0  ;;  %s2398_s0 = smov 0   ;;  %s2400_s30 = smov 0  }
  0x10   :  { %s2402_s20 = smov 0   ;;  %s2404_s21 = smov 0  }
  0x11 LB: > { %2836 = sst [smem:[#allocation14_spill]] %s2278_s0  ;;  %s2419_s1 = sadd.s32 4294967295, %s2290_s21   ;;  %s2290_s21 = sphi %s2404_s21, %s2861_s21   ;;  %s2286_s20 = sphi %s2402_s20, %s2863_s20   ;;  %s2282_s30 = sphi %s2400_s30, %s2865_s30   ;;  %s2278_s0 = sphi %s2398_s0, %s2864_s0  }
  0x12   : > { %2837 = sst [smem:[#allocation15_spill]] %s2286_s20  ;;  %s1926_s22 = sadd.s32 4294967294, %s2290_s21  }
  0x13   : > { %2838 = sst [smem:[#allocation16_spill]] %s2290_s21  ;;  %s2423_s2 = sadd.s32 1, %s2290_s21  }
  0x14   : > { %2839 = sst [smem:[#allocation17_spill]] %s2423_s2  ;;  %s438_s23 = sadd.s32 1, %s2286_s20 }
  0x15   : > { %s435_s24 = ssub.s32 %s2290_s21, %s2423_s2  ;;  %p448_p0 = scmp.ne.s32.totalorder %s2286_s20, %s2282_s30 }
  0x16   : > { %p436_p1 = scmp.eq.s32.totalorder %s435_s24, 0  ;;  %p449_p2 = scmp.eq.s32.totalorder %s2419_s1, 3 }
  0x17   : > { %p454_p3 = scmp.ne.s32.totalorder %s2282_s30, %s2278_s0  ;;  %p455_p4 = scmp.eq.s32.totalorder %s1926_s22, 3 }
  0x18   : > { %s2434_s25 = scalar_select %p436_p1, %s2286_s20, %s438_s23  }
  0x19   : > { %p2436_p5 = por %p449_p2, %p448_p0  ;;  %p2440_p6 = por %p455_p4, %p454_p3 }
  0x1a   : > { %2840 = sst [smem:[#allocation18_spill]] %s2434_s25  ;;  %p1927_p7 = scmp.ge.s32.totalorder %s2290_s21, 1 }
  0x1b   : > { %s2842_s26 = scalar_select %p2440_p6, 1, 0 }
  0x1c   : > { %p488_p8 = scmp.lt.s32.totalorder %s2290_s21, 5  ;;  %p2015_p9 = scmp.eq.s32.totalorder %s2419_s1, 0 }
  0x1d   : > { %2843 = sst [smem:[#allocation19_spill]] %s2842_s26  ;;  %s2292_s23 = smov [#allocation2]  }
  0x1e   : > { %p2447_p10 = pnand %p1927_p7, %p488_p8  ;;  %s2845_s8 = sld [smem:[#allocation28_spill]] }
  0x1f   : > { %s516_s24 = sshll.u32 %s2292_s23, 4  ;;  %s540_s2 = sshll.u32 %s2814_s13, 4  ;;  %s517_s24 = int_to_ptr.vmem [resolvable:$true] %s516_s24  ;;  %s541_s2 = int_to_ptr.hbm [resolvable:$true] %s540_s2 }
  0x20   : > { %p2001_p11 = pneg %p2447_p10  ;;  %s2293_s26 = smov 128  }
  0x21   : > { %s2294_s0 = smov 8   ;;  %s2295_s21 = smov [#allocation5]  }
  0x22   : > { %p2002_p12 = pnand %p2015_p9, %p2001_p11  ;;  %s542_s28 = sshll.u32 %s2295_s21, 4  ;;  %s543_s28 = int_to_ptr.vmem [resolvable:$true] %s542_s28 }
  0x23   : > { %593 = sbr.rel (%p2447_p10) target bundleno = 2877 (0xb3d), region = 92 }
  0x24   : > { %s514_s22 = sshll.u32 %s2845_s8, 4  ;;  %s515_s22 = int_to_ptr.hbm [resolvable:$true] %s514_s22 }
  0x25   : > { %2004 = dma.hbm_to_vmem [thread:$0]  (!%p2002_p12), %s515_s22, 2048, %s517_s24, [#allocation3], %s2293_s26, %s2293_s26, %s2294_s0  }
  0x26   : > { %2007 = dma.hbm_to_vmem [thread:$0]  (!%p2002_p12), %s541_s2, 2048, %s543_s28, [#allocation6], %s2293_s26, %s2293_s26, %s2294_s0  }
  0x28   : > { %2261 = dma.done.wait (%p2015_p9), [#allocation3], 2048  }
  0x29   : > { %2263 = vsyncadd (%p2015_p9), [#allocation3], 4294965248 }
  0x2a   : > { %2265 = dma.done.wait (%p2015_p9), [#allocation6], 2048  }
  0x2b   : > { %2267 = vsyncadd (%p2015_p9), [#allocation6], 4294965248  ;;  %p669_p13 = scmp.lt.s32.totalorder %s2419_s1, 3  ;;  %s2846_s25 = sld [smem:[#allocation20_spill]]  ;;  %vm703_vm0 = vcmask 1043456   ;;  %vm696_vm1 = vcmask 64512   ;;  %v758_v25 = vlaneseq }
  0x2c   : > { %s2847_s22 = sld [smem:[#allocation23_spill]]  ;;  %vm769_vm3 = vcmask 15360   ;;  %vm839_vm5 = vcmask 261120   ;;  %s2742_s2 = sand.u32 1, %s2282_s30  }
  0x2d   : > { %s2473_s20 = scalar_select %p669_p13, %s2419_s1, 3  ;;  %v2490_v26 = vand.u32 127, %v758_v25 }
  0x2e   : > { %s2848_s5 = sld [smem:[#allocation25_spill]] }
  0x2f   : > { %s1981_s0 = sshll.u32 %s2473_s20, 5  ;;  %s2849_s4 = sld [smem:[#allocation24_spill]]  ;;  %vm760_vm2 = vcmp.eq.s32.totalorder %v2490_v26, 0 }
  0x30   : > { %s2853_s6 = sld [smem:[#allocation26_spill]]  ;;  %s1940_s29 = sshll.u32 %s2473_s20, 1 }
  0x31   : > { %s673_s26 = scalar_lea.vmem %s2846_s25, %s1981_s0  ;;  %s2854_s7 = sld [smem:[#allocation27_spill]] }
  0x32   : > { %v694_v0 = vld [vmem:[%s2847_s22] sm:$0xff]  ;;  %v689_v2 = vld [vmem:[%s673_s26 + $0x8] sm:$0xff]  ;;  %v690_v4 = vld [vmem:[%s673_s26 + $0x10] sm:$0xff]  ;;  %s2857_s28 = sld [smem:[#allocation22_spill]]  ;;  %s1983_s20 = sshll.u32 %s2419_s1, 5 }
  0x33   : > { %v688_v1 = vld [vmem:[%s673_s26] sm:$0xff]  ;;  %v695_v3 = vpack.c.bf16 %v694_v0, %v694_v0  ;;  %v691_v5 = vld [vmem:[%s673_s26 + $0x18] sm:$0xff]  ;;  %s2850_s26 = sld [smem:[#allocation21_spill]] }
  0x34   : > { %v692_v7 = vpack.c.bf16 %v689_v2, %v688_v1  ;;  %v693_v8 = vpack.c.bf16 %v691_v5, %v690_v4  ;;  %v2058_v9 = vld [vmem:[%s2848_s5] ss:$0 sm:$0xff] }
  0x35   : > { %v705_v6 = vsel %vm703_vm0, %v695_v3, 0  ;;  %v2059_v13 = vld [vmem:[%s2849_s4] ss:$0 sm:$0xff] }
  0x36   : > { %714 = vmatpush.bf16.msra.mxu0 %v705_v6  ;;  %1984 = vmatpush.bf16.msra.mxu1 %v705_v6 }
  0x39   : > { %1941 = vmatmul.msk.bf16.vlgmr.msra.gmra.mxu0 %vm696_vm1, %v692_v7  ;;  %1942 = vmatmul.msk.bf16.vlgmr.msra.gmra.mxu1 %vm696_vm1, %v693_v8  ;;  %s2522_s27 = scalar_lea.vmem %s2850_s26, %s1981_s0  ;;  %s1934_s0 = sshll.u32 %s2742_s2, 5 }
  0x3a   : > { %v2525_v45 = vld [vmem:[%s2522_s27] sm:$0xff]  ;;  %v2530_v51 = vld [vmem:[%s2522_s27 + $0x8] sm:$0xff]  ;;  %v2535_v57 = vld [vmem:[%s2522_s27 + $0x10] sm:$0xff]  ;;  %s661_s22 = scalar_lea.vmem [#allocation7], %s1934_s0  ;;  %s1767_s0 = scalar_lea.hbm %s2819_s18, %s1983_s20 }
  0x3b   : > { %v2540_v63 = vld [vmem:[%s2522_s27 + $0x18] sm:$0xff]  ;;  %s1768_s21 = sshll.u32 %s661_s22, 4  ;;  %s1770_s23 = sshll.u32 %s1767_s0, 4  ;;  %s1769_s21 = int_to_ptr.vmem [resolvable:$true] %s1768_s21  ;;  %s1771_s23 = int_to_ptr.hbm [resolvable:$true] %s1770_s23 }
  0x3c   : > { %s2202_s24 = sshra.s32 %s1771_s23, 4  ;;  %s2203_s24 = int_to_ptr.hbm [resolvable:$true] %s2202_s24 }
  0x3d   : > { %p2209_p3 = scmp.lt.s32.totalorder %s2203_s24, %s2819_s18 }
  0xb6   : > { %v716_v10 = vpop.f32.mrf.mxu0  ;;  %v721_v11 = vpop.f32.mrf.mxu1 }
  0xb7   : > { %v730_v12 = vmul.f32 %v2058_v9, %v716_v10  ;;  %v748_v21 = vmul.f32 %v2059_v13, %v721_v11  ;;  %v746_v22 = vmul.f32 %v2059_v13, %v716_v10  ;;  %v732_v23 = vmul.f32 %v2058_v9, %v721_v11 }
  0xb9   : > { %734 = vadd.xlane.f32.xlu2 %v730_v12 }
  0xbe   : > { %v718_v14 = vpop.f32.mrf.mxu0  ;;  %v723_v15 = vpop.f32.mrf.mxu1 }
  0xbf   : > { %v939_v16 = vpack.c.bf16 %v723_v15, %v721_v11  ;;  %v749_v17 = vmul.f32 %v2059_v13, %v723_v15  ;;  %v747_v18 = vmul.f32 %v2059_v13, %v718_v14  ;;  %v731_v19 = vmul.f32 %v2058_v9, %v718_v14 }
  0xc0   : > { %v938_v20 = vpack.c.bf16 %v718_v14, %v716_v10  ;;  %v733_v24 = vmul.f32 %v2058_v9, %v723_v15 }
  0xc1   : > { %952 = vmatpush.bf16.msra.mxu2 %v939_v16  ;;  %756 = vadd.xlane.f32.xlu0 %v749_v17 }
  0xc2   : > { %752 = vadd.xlane.f32.xlu1 %v747_v18  ;;  %736 = vadd.xlane.f32.xlu2 %v731_v19 }
  0xc5   : > { %953 = vmatpush.bf16.msra.mxu2 %v938_v20 }
  0xc9   : > { %754 = vadd.xlane.f32.xlu0 %v748_v21 }
  0xca   : > { %750 = vadd.xlane.f32.xlu1 %v746_v22 }
  0xd1   : > { %738 = vadd.xlane.f32.xlu0 %v732_v23 }
  0xd2   : > { %740 = vadd.xlane.f32.xlu1 %v733_v24 }
 0x12c   : > { %v735_v34 = vpop.xlane.xlu2 %734 }
 0x12d   : > { %v761_v36 = vsel %vm760_vm2, %v735_v34, 1.0 }
 0x134   : > { %v757_v27 = vpop.xlane.xlu0 %756 }
 0x135   : > { %v768_v28 = vsel %vm760_vm2, 1.0, %v757_v27  ;;  %v753_v29 = vpop.xlane.xlu1 %752  ;;  %v737_v37 = vpop.xlane.xlu2 %736 }
 0x136   : > { %1943 = vmatpush.xpose.msk.msrb.mxu1 %vm769_vm3, %v768_v28  ;;  %v766_v32 = vsel %vm760_vm2, 1.0, %v753_v29  ;;  %v762_v38 = vsel %vm760_vm2, %v737_v37, 1.0 }
 0x13c   : > { %v755_v30 = vpop.xlane.xlu0 %754 }
 0x13d   : > { %v767_v31 = vsel %vm760_vm2, 1.0, %v755_v30  ;;  %v751_v33 = vpop.xlane.xlu1 %750 }
 0x13e   : > { %1944 = vmatpush.xpose.msk.msrb.mxu1 %vm769_vm3, %v767_v31  ;;  %v765_v35 = vsel %vm760_vm2, 1.0, %v751_v33 }
 0x142   : > { %1945 = vmatpush.xpose.msk.msrb.mxu1 %vm769_vm3, %v766_v32 }
 0x144   : > { %v739_v39 = vpop.xlane.xlu0 %738 }
 0x145   : > { %v763_v40 = vsel %vm760_vm2, %v739_v39, 1.0  ;;  %v741_v41 = vpop.xlane.xlu1 %740 }
 0x146   : > { %1946 = vmatpush.xpose.msk.msrb.mxu1 %vm769_vm3, %v765_v35  ;;  %v764_v42 = vsel %vm760_vm2, %v741_v41, 1.0 }
 0x149   : > { %1947 = vmatmul.msk.f32.vlgmr.msrb.gmra.mxu1 %vm769_vm3, %v761_v36 }
 0x151   : > { %1948 = vmatmul.msk.f32.gmra.mxu1 %vm769_vm3, %v762_v38 }
 0x159   : > { %1949 = vmatmul.msk.f32.gmra.mxu1 %vm769_vm3, %v763_v40 }
 0x161   : > { %1950 = vmatmul.msk.f32.gmra.mxu1 %vm769_vm3, %v764_v42 }
 0x1c6   : > { %v811_v43 = vpop.f32.mrf.mxu1 }
 0x1c7   : > { %vm823_vm4 = vcmp.gt.f32.partialorder %v811_v43, 0.0  ;;  %v827_v44 = vmul.f32 0.2, %v811_v43 }
 0x1c9   : > { %v831_v46 = vsel %vm823_vm4, %v811_v43, %v827_v44 }
 0x1ca   : > { %v835_v47 = vadd.f32 %v831_v46, %v2525_v45 }
 0x1cc   : > { %v840_v48 = vsel %vm839_vm5, %v835_v47, -inf }
 0x1cd   : > { %841 = vmax.xlane.f32.xlu2 %v840_v48 }
 0x1ce   : > { %v814_v49 = vpop.f32.mrf.mxu1 }
 0x1cf   : > { %vm824_vm6 = vcmp.gt.f32.partialorder %v814_v49, 0.0  ;;  %v828_v50 = vmul.f32 0.2, %v814_v49 }
 0x1d1   : > { %v832_v52 = vsel %vm824_vm6, %v814_v49, %v828_v50 }
 0x1d2   : > { %v836_v53 = vadd.f32 %v832_v52, %v2530_v51 }
 0x1d4   : > { %v843_v54 = vsel %vm839_vm5, %v836_v53, -inf }
 0x1d5   : > { %844 = vmax.xlane.f32.xlu0 %v843_v54 }
 0x1d6   : > { %v817_v55 = vpop.f32.mrf.mxu1 }
 0x1d7   : > { %vm825_vm7 = vcmp.gt.f32.partialorder %v817_v55, 0.0  ;;  %v829_v56 = vmul.f32 0.2, %v817_v55 }
 0x1d9   : > { %v833_v58 = vsel %vm825_vm7, %v817_v55, %v829_v56 }
 0x1da   : > { %v837_v59 = vadd.f32 %v833_v58, %v2535_v57 }
 0x1dc   : > { %v846_v60 = vsel %vm839_vm5, %v837_v59, -inf }
 0x1dd   : > { %847 = vmax.xlane.f32.xlu1 %v846_v60 }
 0x1de   : > { %v820_v61 = vpop.f32.mrf.mxu1 }
 0x1df   : > { %vm826_vm8 = vcmp.gt.f32.partialorder %v820_v61, 0.0  ;;  %v830_v62 = vmul.f32 0.2, %v820_v61 }
 0x1e1   : > { %v834_v0 = vsel %vm826_vm8, %v820_v61, %v830_v62 }
 0x1e2   : > { %v838_v1 = vadd.f32 %v834_v0, %v2540_v63 }
 0x1e4   : > { %v849_v2 = vsel %vm839_vm5, %v838_v1, -inf }
 0x1e5   : > { %850 = vmax.xlane.f32.xlu2 %v849_v2 }
 0x240   : > { %v842_v3 = vpop.xlane.xlu2 %841 }
 0x241   : > { %v852_v4 = vsub.f32 %v835_v47, %v842_v3 }
 0x243   : > { %v856_v5 = vmul.f32 1.442695, %v852_v4 }
 0x245   : > { %2070 = vpow2.f32 %v856_v5 }
 0x248   : > { %v845_v6 = vpop.xlane.xlu0 %844 }
 0x249   : > { %v853_v7 = vsub.f32 %v836_v53, %v845_v6 }
 0x24b   : > { %v2071_v8 = vpop.eup %2070  ;;  %v858_v9 = vmul.f32 1.442695, %v853_v7 }
 0x24c   : > { %v864_v10 = vsel %vm839_vm5, %v2071_v8, 0.0 }
 0x24d   : > { %2072 = vpow2.f32 %v858_v9  ;;  %865 = vadd.xlane.f32.xlu0 %v864_v10 }
 0x250   : > { %v848_v11 = vpop.xlane.xlu1 %847 }
 0x251   : > { %v854_v12 = vsub.f32 %v837_v59, %v848_v11 }
 0x253   : > { %v2073_v13 = vpop.eup %2072  ;;  %v860_v14 = vmul.f32 1.442695, %v854_v12 }
 0x254   : > { %v867_v15 = vsel %vm839_vm5, %v2073_v13, 0.0 }
 0x255   : > { %2074 = vpow2.f32 %v860_v14  ;;  %868 = vadd.xlane.f32.xlu1 %v867_v15 }
 0x258   : > { %v851_v16 = vpop.xlane.xlu2 %850 }
 0x259   : > { %v855_v17 = vsub.f32 %v838_v1, %v851_v16 }
 0x25b   : > { %v2546_v18 = vpop.eup %2074  ;;  %v862_v19 = vmul.f32 1.442695, %v855_v17  ;;  %v1047_v17 = vld [vmem:[#allocation2 + $0x70] sm:$0xff] }
 0x25c   : > { %v870_v20 = vsel %vm839_vm5, %v2546_v18, 0.0 }
 0x25d   : > { %2076 = vpow2.f32 %v862_v19  ;;  %871 = vadd.xlane.f32.xlu2 %v870_v20  ;;  %v1048_v19 = vld [vmem:[#allocation2 + $0x78] sm:$0xff] }
 0x25e   : > { %v1056_v20 = vpack.c.bf16 %v1048_v19, %v1047_v17 }
 0x260   : > { %1057 = vmatpush.bf16.msra.mxu3 %v1056_v20 }
 0x263   : > { %v2550_v21 = vpop.eup %2076 }
 0x264   : > { %v873_v22 = vsel %vm839_vm5, %v2550_v21, 0.0 }
 0x265   : > { %874 = vadd.xlane.f32.xlu0 %v873_v22  ;;  %v1045_v22 = vld [vmem:[#allocation2 + $0x60] sm:$0xff] }
 0x2c0   : > { %v866_v23 = vpop.xlane.xlu0 %865 }
 0x2c1   : > { %2078 = vrcp.f32 %v866_v23  ;;  %v887_v34 = vand.u32 2147483648, %v866_v23  ;;  %vm881_vm10 = vweird.f32 %v866_v23  ;;  %v885_v36 = vand.u32 2147483647, %v866_v23 }
 0x2c3   : > { %v888_v42 = vor.u32 1.1754944e-38, %v887_v34  ;;  %vm886_vm14 = vcmp.eq.f32.partialorder %v885_v36, 8.507059e+37  ;;  %v1041_v34 = vld [vmem:[#allocation2 + $0x40] sm:$0xff] }
 0x2c7   : > { %v2079_v24 = vpop.eup %2078 }
 0x2c8   : > { %v877_v25 = vmul.f32 %v2079_v24, %v866_v23  ;;  %v869_v27 = vpop.xlane.xlu1 %868  ;;  %vm882_vm9 = vweird.f32 %v2079_v24  ;;  %v1046_v23 = vld [vmem:[#allocation2 + $0x68] sm:$0xff] }
 0x2c9   : > { %2080 = vrcp.f32 %v869_v27  ;;  %vm2554_vm11 = vmor %vm881_vm10, %vm882_vm9  ;;  %v902_v39 = vand.u32 2147483648, %v869_v27  ;;  %v900_v40 = vand.u32 2147483647, %v869_v27  ;;  %vm896_vm13 = vweird.f32 %v869_v27 }
 0x2ca   : > { %v878_v28 = vsub.f32 1.0, %v877_v25  ;;  %v1055_v25 = vpack.c.bf16 %v1046_v23, %v1045_v22 }
 0x2cb   : > { %v903_v46 = vor.u32 1.1754944e-38, %v902_v39  ;;  %vm901_vm0 = vcmp.eq.f32.partialorder %v900_v40, 8.507059e+37 }
 0x2cc   : > { %v879_v29 = vmul.f32 %v2079_v24, %v878_v28  ;;  %1058 = vmatpush.bf16.msra.mxu3 %v1055_v25  ;;  %v2060_v25 = vld [vmem:[%s2853_s6] ss:$0 sm:$0xff] }
 0x2ce   : > { %v880_v33 = vadd.f32 %v2079_v24, %v879_v29 }
 0x2cf   : > { %v2081_v30 = vpop.eup %2080 }
 0x2d0   : > { %v892_v31 = vmul.f32 %v2081_v30, %v869_v27  ;;  %v872_v32 = vpop.xlane.xlu2 %871  ;;  %vm897_vm12 = vweird.f32 %v2081_v30  ;;  %v884_v41 = vsel %vm2554_vm11, %v2079_v24, %v880_v33  ;;  %v1044_v27 = vld [vmem:[#allocation2 + $0x58] sm:$0xff] }
 0x2d1   : > { %2082 = vrcp.f32 %v872_v32  ;;  %vm898_vm15 = vmor %vm896_vm13, %vm897_vm12  ;;  %v889_v49 = vsel %vm886_vm14, %v888_v42, %v884_v41  ;;  %v917_v62 = vand.u32 2147483648, %v872_v32  ;;  %vm911_vm4 = vweird.f32 %v872_v32 }
 0x2d2   : > { %v893_v35 = vsub.f32 1.0, %v892_v31  ;;  %v890_v54 = vmul.f32 %v2071_v8, %v889_v49  ;;  %v915_v0 = vand.u32 2147483647, %v872_v32 }
 0x2d3   : > { %v918_v6 = vor.u32 1.1754944e-38, %v917_v62  ;;  %v1033_v62 = vld [vmem:[#allocation2] sm:$0xff] }
 0x2d4   : > { %v894_v38 = vmul.f32 %v2081_v30, %v893_v35  ;;  %vm916_vm8 = vcmp.eq.f32.partialorder %v915_v0, 8.507059e+37  ;;  %v1042_v35 = vld [vmem:[#allocation2 + $0x48] sm:$0xff] }
 0x2d5   : > { %v1053_v37 = vpack.c.bf16 %v1042_v35, %v1041_v34 }
 0x2d6   : > { %v895_v43 = vadd.f32 %v2081_v30, %v894_v38 }
 0x2d7   : > { %v2083_v44 = vpop.eup %2082 }
 0x2d8   : > { %v907_v47 = vmul.f32 %v2083_v44, %v872_v32  ;;  %v875_v48 = vpop.xlane.xlu0 %874  ;;  %v899_v50 = vsel %vm898_vm15, %v2081_v30, %v895_v43  ;;  %vm912_vm1 = vweird.f32 %v2083_v44  ;;  %v1039_v43 = vld [vmem:[#allocation2 + $0x30] sm:$0xff] }
 0x2d9   : > { %2084 = vrcp.f32 %v875_v48  ;;  %v904_v53 = vsel %vm901_vm0, %v903_v46, %v899_v50  ;;  %vm913_vm6 = vmor %vm911_vm4, %vm912_vm1  ;;  %v932_v2 = vand.u32 2147483648, %v875_v48  ;;  %v930_v4 = vand.u32 2147483647, %v875_v48 }
 0x2da   : > { %v908_v52 = vsub.f32 1.0, %v907_v47  ;;  %v905_v55 = vmul.f32 %v2073_v13, %v904_v53  ;;  %vm926_vm9 = vweird.f32 %v875_v48  ;;  %v1038_v53 = vld [vmem:[#allocation2 + $0x28] sm:$0xff] }
 0x2db   : > { %v933_v8 = vor.u32 1.1754944e-38, %v932_v2  ;;  %vm931_vm11 = vcmp.eq.f32.partialorder %v930_v4, 8.507059e+37 }
 0x2dc   : > { %v909_v56 = vmul.f32 %v2083_v44, %v908_v52  ;;  %v936_v58 = vpack.c.bf16 %v905_v55, %v890_v54  ;;  %v1037_v52 = vld [vmem:[#allocation2 + $0x20] sm:$0xff] }
 0x2dd   : > { %v1051_v54 = vpack.c.bf16 %v1038_v53, %v1037_v52 }
 0x2de   : > { %1951 = vmatmul.msk.bf16.vlgmr.msra.gmra.mxu2 %vm839_vm5, %v936_v58  ;;  %v910_v60 = vadd.f32 %v2083_v44, %v909_v56 }
 0x2df   : > { %v2085_v59 = vpop.eup %2084 }
 0x2e0   : > { %v922_v61 = vmul.f32 %v2085_v59, %v875_v48  ;;  %vm927_vm7 = vweird.f32 %v2085_v59  ;;  %v914_v5 = vsel %vm913_vm6, %v2083_v44, %v910_v60  ;;  %v1040_v44 = vld [vmem:[#allocation2 + $0x38] sm:$0xff]  ;;  %v1035_v60 = vld [vmem:[#allocation2 + $0x10] sm:$0xff] }
 0x2e1   : > { %vm928_vm10 = vmor %vm926_vm9, %vm927_vm7  ;;  %v919_v9 = vsel %vm916_vm8, %v918_v6, %v914_v5  ;;  %v1052_v46 = vpack.c.bf16 %v1040_v44, %v1039_v43 }
 0x2e2   : > { %v923_v1 = vsub.f32 1.0, %v922_v61  ;;  %v920_v12 = vmul.f32 %v2546_v18, %v919_v9  ;;  %v1036_v61 = vld [vmem:[#allocation2 + $0x18] sm:$0xff] }
 0x2e3   : > { %v1050_v0 = vpack.c.bf16 %v1036_v61, %v1035_v60 }
 0x2e4   : > { %v924_v3 = vmul.f32 %v2085_v59, %v923_v1  ;;  %v1034_v1 = vld [vmem:[#allocation2 + $0x8] sm:$0xff] }
 0x2e5   : > { %v1049_v4 = vpack.c.bf16 %v1034_v1, %v1033_v62 }
 0x2e6   : > { %v925_v7 = vadd.f32 %v2085_v59, %v924_v3 }
 0x2e8   : > { %v929_v10 = vsel %vm928_vm10, %v2085_v59, %v925_v7 }
 0x2e9   : > { %v934_v11 = vsel %vm931_vm11, %v933_v8, %v929_v10 }
 0x2ea   : > { %v935_v13 = vmul.f32 %v2550_v21, %v934_v11  ;;  %v1043_v21 = vld [vmem:[#allocation2 + $0x50] sm:$0xff] }
 0x2eb   : > { %v1054_v28 = vpack.c.bf16 %v1044_v27, %v1043_v21 }
 0x2ec   : > { %v937_v14 = vpack.c.bf16 %v935_v13, %v920_v12 }
 0x2ed   : > { %1059 = vmatpush.bf16.msra.mxu3 %v1054_v28  ;;  %v2061_v28 = vld [vmem:[%s2854_s7] ss:$0 sm:$0xff] }
 0x2ee   : > { %1952 = vmatmul.msk.bf16.gmra.mxu2 %vm839_vm5, %v937_v14 }
 0x2f1   : > { %1060 = vmatpush.bf16.msra.mxu3 %v1053_v37 }
 0x2f5   : > { %1061 = vmatpush.bf16.msra.mxu3 %v1052_v46 }
 0x2f9   : > { %1062 = vmatpush.bf16.msra.mxu3 %v1051_v54 }
 0x2fd   : > { %1063 = vmatpush.bf16.msra.mxu3 %v1050_v0 }
 0x301   : > { %1064 = vmatpush.bf16.msra.mxu3 %v1049_v4 }
 0x361   : > { %v2564_v15 = vpop.f32.mrf.mxu2 }
 0x362   : > { %v974_v29 = vmul.f32 %v2564_v15, %v2564_v15 }
 0x369   : > { %v2566_v16 = vpop.f32.mrf.mxu2 }
 0x36a   : > { %v975_v18 = vmul.f32 %v2566_v16, %v2566_v16  ;;  %v965_v30 = vadd.f32 %v2566_v16, %v2564_v15 }
 0x36c   : > { %v978_v32 = vadd.f32 %v975_v18, %v974_v29 }
 0x371   : > { %v2568_v24 = vpop.f32.mrf.mxu2 }
 0x372   : > { %v976_v31 = vmul.f32 %v2568_v24, %v2568_v24  ;;  %v966_v33 = vadd.f32 %v965_v30, %v2568_v24 }
 0x374   : > { %v979_v38 = vadd.f32 %v978_v32, %v976_v31 }
 0x379   : > { %v2579_v36 = vpop.f32.mrf.mxu2 }
 0x37a   : > { %v967_v39 = vadd.f32 %v966_v33, %v2579_v36  ;;  %v977_v40 = vmul.f32 %v2579_v36, %v2579_v36 }
 0x37c   : > { %v968_v41 = vrot.slane %v967_v39, 4  ;;  %v980_v42 = vadd.f32 %v979_v38, %v977_v40 }
 0x37e   : > { %v969_v47 = vadd.f32 %v968_v41, %v967_v39  ;;  %v981_v48 = vrot.slane %v980_v42, 4 }
 0x380   : > { %v970_v49 = vrot.slane %v969_v47, 2  ;;  %v982_v50 = vadd.f32 %v981_v48, %v980_v42 }
 0x382   : > { %v971_v55 = vadd.f32 %v970_v49, %v969_v47  ;;  %v983_v56 = vrot.slane %v982_v50, 2 }
 0x384   : > { %v972_v58 = vrot.slane %v971_v55, 1  ;;  %v984_v59 = vadd.f32 %v983_v56, %v982_v50 }
 0x386   : > { %v973_v2 = vadd.f32 %v972_v58, %v971_v55  ;;  %v985_v3 = vrot.slane %v984_v59, 1 }
 0x388   : > { %v986_v5 = vadd.f32 %v985_v3, %v984_v59  ;;  %v987_v6 = vmul.f32 0.03125, %v973_v2 }
 0x38a   : > { %v988_v7 = vmul.f32 0.03125, %v986_v5  ;;  %v989_v8 = vmul.f32 %v987_v6, %v987_v6  ;;  %v992_v22 = vsub.f32 %v2564_v15, %v987_v6  ;;  %v993_v23 = vsub.f32 %v2566_v16, %v987_v6 }
 0x38b   : > { %v995_v33 = vsub.f32 %v2579_v36, %v987_v6  ;;  %v994_v16 = vsub.f32 %v2568_v24, %v987_v6  ;;  %v2062_v36 = vld [vmem:[%s2810_s9] ss:$0 sm:$0xff] }
 0x38c   : > { %v990_v9 = vsub.f32 %v988_v7, %v989_v8  ;;  %v2063_v24 = vld [vmem:[%s2811_s10] ss:$0 sm:$0xff] }
 0x38e   : > { %v991_v10 = vmax.f32 %v990_v9, 0.0 }
 0x390   : > { %v996_v11 = vadd.f32 1e-05, %v991_v10 }
 0x392   : > { %2086 = vrsqrt.f32 %v996_v11  ;;  %vm1003_vm13 = vweird.f32 %v996_v11 }
 0x398   : > { %v2087_v12 = vpop.eup %2086 }
 0x399   : > { %v998_v13 = vmul.f32 %v2087_v12, %v996_v11  ;;  %vm1004_vm12 = vweird.f32 %v2087_v12 }
 0x39a   : > { %vm1005_vm14 = vmor %vm1003_vm13, %vm1004_vm12 }
 0x39b   : > { %v999_v14 = vmul.f32 %v2087_v12, %v998_v13 }
 0x39d   : > { %v1000_v17 = vmul.f32 0.5, %v999_v14 }
 0x39f   : > { %v1001_v19 = vsub.f32 1.5, %v1000_v17 }
 0x3a1   : > { %v1002_v20 = vmul.f32 %v2087_v12, %v1001_v19 }
 0x3a3   : > { %v1006_v18 = vsel %vm1005_vm14, %v2087_v12, %v1002_v20 }
 0x3a4   : > { %v1007_v21 = vmul.f32 %v1006_v18, %v992_v22  ;;  %v1008_v27 = vmul.f32 %v1006_v18, %v993_v23  ;;  %v1010_v35 = vmul.f32 %v1006_v18, %v995_v33  ;;  %v1009_v38 = vmul.f32 %v1006_v18, %v994_v16 }
 0x3a6   : > { %v1015_v29 = vmul.f32 %v2060_v25, %v1007_v21  ;;  %v1016_v30 = vmul.f32 %v2060_v25, %v1008_v27  ;;  %v1017_v39 = vmul.f32 %v2060_v25, %v1009_v38  ;;  %v1018_v40 = vmul.f32 %v2060_v25, %v1010_v35 }
 0x3a8   : > { %v1023_v31 = vadd.f32 %v2061_v28, %v1015_v29  ;;  %v1024_v32 = vadd.f32 %v2061_v28, %v1016_v30  ;;  %v1025_v41 = vadd.f32 %v2061_v28, %v1017_v39  ;;  %v1026_v42 = vadd.f32 %v2061_v28, %v1018_v40 }
 0x3aa   : > { %v1027_v15 = vmax.f32 %v1023_v31, 0.0  ;;  %v1028_v34 = vmax.f32 %v1024_v32, 0.0  ;;  %v1029_v43 = vmax.f32 %v1025_v41, 0.0  ;;  %v1030_v44 = vmax.f32 %v1026_v42, 0.0 }
 0x3ac   : > { %v1031_v37 = vpack.c.bf16 %v1028_v34, %v1027_v15  ;;  %v1032_v46 = vpack.c.bf16 %v1030_v44, %v1029_v43 }
 0x3ae   : > { %1065 = vmatmul.bf16.vlgmr.msra.gmra.mxu3 %v1031_v37 }
 0x3be   : > { %1070 = vmatmul.bf16.gmra.mxu3 %v1032_v46 }
 0x431   : > { %v1066_v47 = vpop.f32.mrf.mxu3 }
 0x432   : > { %v1080_v55 = vmul.f32 %v2063_v24, %v1066_v47  ;;  %v1096_v61 = vmul.f32 %v2062_v36, %v1066_v47 }
 0x439   : > { %v1068_v48 = vpop.f32.mrf.mxu3 }
 0x43a   : > { %v1097_v49 = vmul.f32 %v2062_v36, %v1068_v48  ;;  %v1081_v52 = vmul.f32 %v2063_v24, %v1068_v48  ;;  %v1283_v59 = vpack.c.bf16 %v1068_v48, %v1066_v47 }
 0x43c   : > { %1102 = vadd.xlane.f32.xlu0 %v1097_v49 }
 0x441   : > { %v1071_v50 = vpop.f32.mrf.mxu3 }
 0x442   : > { %v1098_v53 = vmul.f32 %v2062_v36, %v1071_v50  ;;  %v1082_v62 = vmul.f32 %v2063_v24, %v1071_v50 }
 0x444   : > { %1086 = vadd.xlane.f32.xlu0 %v1081_v52  ;;  %1104 = vadd.xlane.f32.xlu2 %v1098_v53 }
 0x449   : > { %v1073_v54 = vpop.f32.mrf.mxu3 }
 0x44a   : > { %v1284_v56 = vpack.c.bf16 %v1073_v54, %v1071_v50  ;;  %v1099_v58 = vmul.f32 %v2062_v36, %v1073_v54  ;;  %v1083_v60 = vmul.f32 %v2063_v24, %v1073_v54 }
 0x44c   : > { %1084 = vadd.xlane.f32.xlu2 %v1080_v55  ;;  %1297 = vmatpush.bf16.msrb.mxu2 %v1284_v56 }
 0x44d   : > { %1106 = vadd.xlane.f32.xlu1 %v1099_v58 }
 0x450   : > { %1298 = vmatpush.bf16.msrb.mxu2 %v1283_v59 }
 0x454   : > { %1090 = vadd.xlane.f32.xlu2 %v1083_v60 }
 0x455   : > { %1100 = vadd.xlane.f32.xlu1 %v1096_v61 }
 0x45d   : > { %1088 = vadd.xlane.f32.xlu1 %v1082_v62 }
 0x4af   : > { %v1103_v4 = vpop.xlane.xlu0 %1102 }
 0x4b0   : > { %v1113_v5 = vsel %vm760_vm2, 1.0, %v1103_v4 }
 0x4b7   : > { %v1105_v2 = vpop.xlane.xlu2 %1104  ;;  %v1087_v10 = vpop.xlane.xlu0 %1086 }
 0x4b8   : > { %v1114_v3 = vsel %vm760_vm2, 1.0, %v1105_v2  ;;  %v1109_v11 = vsel %vm760_vm2, %v1087_v10, 1.0 }
 0x4bf   : > { %v1085_v7 = vpop.xlane.xlu2 %1084 }
 0x4c0   : > { %v1107_v0 = vpop.xlane.xlu1 %1106  ;;  %v1108_v9 = vsel %vm760_vm2, %v1085_v7, 1.0 }
 0x4c1   : > { %v1115_v1 = vsel %vm760_vm2, 1.0, %v1107_v0 }
 0x4c2   : > { %1953 = vmatpush.xpose.msk.msrb.mxu0 %vm769_vm3, %v1115_v1 }
 0x4c6   : > { %1954 = vmatpush.xpose.msk.msrb.mxu0 %vm769_vm3, %v1114_v3 }
 0x4c7   : > { %v1091_v14 = vpop.xlane.xlu2 %1090 }
 0x4c8   : > { %v1101_v6 = vpop.xlane.xlu1 %1100  ;;  %v1111_v17 = vsel %vm760_vm2, %v1091_v14, 1.0 }
 0x4c9   : > { %v1112_v8 = vsel %vm760_vm2, 1.0, %v1101_v6 }
 0x4ca   : > { %1955 = vmatpush.xpose.msk.msrb.mxu0 %vm769_vm3, %v1113_v5 }
 0x4ce   : > { %1956 = vmatpush.xpose.msk.msrb.mxu0 %vm769_vm3, %v1112_v8 }
 0x4d0   : > { %v1089_v12 = vpop.xlane.xlu1 %1088 }
 0x4d1   : > { %1957 = vmatmul.msk.f32.vlgmr.msrb.gmra.mxu0 %vm769_vm3, %v1108_v9  ;;  %v1110_v13 = vsel %vm760_vm2, %v1089_v12, 1.0 }
 0x4d9   : > { %1958 = vmatmul.msk.f32.gmra.mxu0 %vm769_vm3, %v1109_v11 }
 0x4e1   : > { %1959 = vmatmul.msk.f32.gmra.mxu0 %vm769_vm3, %v1110_v13 }
 0x4e9   : > { %1960 = vmatmul.msk.f32.gmra.mxu0 %vm769_vm3, %v1111_v17 }
 0x54e   : > { %v1157_v19 = vpop.f32.mrf.mxu0 }
 0x54f   : > { %vm1169_vm15 = vcmp.gt.f32.partialorder %v1157_v19, 0.0  ;;  %v1173_v20 = vmul.f32 0.2, %v1157_v19 }
 0x551   : > { %v1177_v22 = vsel %vm1169_vm15, %v1157_v19, %v1173_v20 }
 0x552   : > { %v1181_v23 = vadd.f32 %v1177_v22, %v2525_v45 }
 0x554   : > { %v1185_v25 = vsel %vm839_vm5, %v1181_v23, -inf }
 0x555   : > { %1186 = vmax.xlane.f32.xlu0 %v1185_v25 }
 0x556   : > { %v1160_v18 = vpop.f32.mrf.mxu0 }
 0x557   : > { %vm1170_vm0 = vcmp.gt.f32.partialorder %v1160_v18, 0.0  ;;  %v1174_v21 = vmul.f32 0.2, %v1160_v18 }
 0x559   : > { %v1178_v27 = vsel %vm1170_vm0, %v1160_v18, %v1174_v21 }
 0x55a   : > { %v1182_v28 = vadd.f32 %v1178_v27, %v2530_v51 }
 0x55c   : > { %v1188_v29 = vsel %vm839_vm5, %v1182_v28, -inf }
 0x55d   : > { %1189 = vmax.xlane.f32.xlu1 %v1188_v29 }
 0x55e   : > { %v1163_v30 = vpop.f32.mrf.mxu0 }
 0x55f   : > { %vm1171_vm1 = vcmp.gt.f32.partialorder %v1163_v30, 0.0  ;;  %v1175_v31 = vmul.f32 0.2, %v1163_v30 }
 0x561   : > { %v1179_v32 = vsel %vm1171_vm1, %v1163_v30, %v1175_v31 }
 0x562   : > { %v1183_v33 = vadd.f32 %v1179_v32, %v2535_v57 }
 0x564   : > { %v1191_v45 = vsel %vm839_vm5, %v1183_v33, -inf }
 0x565   : > { %1192 = vmax.xlane.f32.xlu2 %v1191_v45 }
 0x566   : > { %v1166_v15 = vpop.f32.mrf.mxu0 }
 0x567   : > { %vm1172_vm4 = vcmp.gt.f32.partialorder %v1166_v15, 0.0  ;;  %v1176_v34 = vmul.f32 0.2, %v1166_v15 }
 0x569   : > { %v1180_v16 = vsel %vm1172_vm4, %v1166_v15, %v1176_v34 }
 0x56a   : > { %v1184_v35 = vadd.f32 %v1180_v16, %v2540_v63 }
 0x56c   : > { %v1194_v51 = vsel %vm839_vm5, %v1184_v35, -inf }
 0x56d   : > { %1195 = vmax.xlane.f32.xlu0 %v1194_v51 }
 0x5c8   : > { %v1187_v37 = vpop.xlane.xlu0 %1186 }
 0x5c9   : > { %v1197_v38 = vsub.f32 %v1181_v23, %v1187_v37 }
 0x5cb   : > { %v1201_v39 = vmul.f32 1.442695, %v1197_v38 }
 0x5cd   : > { %2088 = vpow2.f32 %v1201_v39 }
 0x5d0   : > { %v1190_v40 = vpop.xlane.xlu1 %1189 }
 0x5d1   : > { %v1198_v41 = vsub.f32 %v1182_v28, %v1190_v40 }
 0x5d3   : > { %v2089_v42 = vpop.eup %2088  ;;  %v1203_v57 = vmul.f32 1.442695, %v1198_v41 }
 0x5d4   : > { %v1209_v43 = vsel %vm839_vm5, %v2089_v42, 0.0 }
 0x5d5   : > { %2090 = vpow2.f32 %v1203_v57  ;;  %1210 = vadd.xlane.f32.xlu1 %v1209_v43 }
 0x5d8   : > { %v1193_v44 = vpop.xlane.xlu2 %1192 }
 0x5d9   : > { %v1199_v46 = vsub.f32 %v1183_v33, %v1193_v44 }
 0x5db   : > { %v2091_v47 = vpop.eup %2090  ;;  %v1205_v36 = vmul.f32 1.442695, %v1199_v46 }
 0x5dc   : > { %v1212_v63 = vsel %vm839_vm5, %v2091_v47, 0.0 }
 0x5dd   : > { %2092 = vpow2.f32 %v1205_v36  ;;  %1213 = vadd.xlane.f32.xlu2 %v1212_v63  ;;  %v1393_v36 = vld [vmem:[#allocation5 + $0x78] sm:$0xff] }
 0x5e0   : > { %v1196_v48 = vpop.xlane.xlu0 %1195 }
 0x5e1   : > { %v1200_v49 = vsub.f32 %v1184_v35, %v1196_v48 }
 0x5e3   : > { %v2634_v24 = vpop.eup %2092  ;;  %v1207_v50 = vmul.f32 1.442695, %v1200_v49  ;;  %v1390_v49 = vld [vmem:[#allocation5 + $0x60] sm:$0xff] }
 0x5e4   : > { %v1215_v52 = vsel %vm839_vm5, %v2634_v24, 0.0 }
 0x5e5   : > { %2094 = vpow2.f32 %v1207_v50  ;;  %1216 = vadd.xlane.f32.xlu0 %v1215_v52  ;;  %v1391_v50 = vld [vmem:[#allocation5 + $0x68] sm:$0xff] }
 0x5e6   : > { %v1400_v52 = vpack.c.bf16 %v1391_v50, %v1390_v49 }
 0x5eb   : > { %v2638_v53 = vpop.eup %2094 }
 0x5ec   : > { %v1218_v54 = vsel %vm839_vm5, %v2638_v53, 0.0 }
 0x5ed   : > { %1219 = vadd.xlane.f32.xlu1 %v1218_v54  ;;  %v1389_v54 = vld [vmem:[#allocation5 + $0x58] sm:$0xff] }
 0x648   : > { %v1211_v55 = vpop.xlane.xlu1 %1210 }
 0x649   : > { %2096 = vrcp.f32 %v1211_v55  ;;  %v1232_v3 = vand.u32 2147483648, %v1211_v55  ;;  %vm1226_vm7 = vweird.f32 %v1211_v55  ;;  %v1230_v5 = vand.u32 2147483647, %v1211_v55 }
 0x64b   : > { %v1233_v11 = vor.u32 1.1754944e-38, %v1232_v3  ;;  %vm1231_vm11 = vcmp.eq.f32.partialorder %v1230_v5, 8.507059e+37 }
 0x64f   : > { %v2097_v56 = vpop.eup %2096 }
 0x650   : > { %v1222_v58 = vmul.f32 %v2097_v56, %v1211_v55  ;;  %v1214_v59 = vpop.xlane.xlu2 %1213  ;;  %vm1227_vm6 = vweird.f32 %v2097_v56 }
 0x651   : > { %2098 = vrcp.f32 %v1214_v59  ;;  %vm2642_vm8 = vmor %vm1226_vm7, %vm1227_vm6  ;;  %v1247_v8 = vand.u32 2147483648, %v1214_v59  ;;  %v1245_v10 = vand.u32 2147483647, %v1214_v59  ;;  %vm1241_vm10 = vweird.f32 %v1214_v59 }
 0x652   : > { %v1223_v60 = vsub.f32 1.0, %v1222_v58 }
 0x653   : > { %v1248_v17 = vor.u32 1.1754944e-38, %v1247_v8  ;;  %vm1246_vm13 = vcmp.eq.f32.partialorder %v1245_v10, 8.507059e+37  ;;  %v1384_v8 = vld [vmem:[#allocation5 + $0x30] sm:$0xff] }
 0x654   : > { %v1224_v61 = vmul.f32 %v2097_v56, %v1223_v60 }
 0x656   : > { %v1225_v2 = vadd.f32 %v2097_v56, %v1224_v61 }
 0x657   : > { %v2099_v62 = vpop.eup %2098 }
 0x658   : > { %v1237_v0 = vmul.f32 %v2099_v62, %v1214_v59  ;;  %v1217_v1 = vpop.xlane.xlu0 %1216  ;;  %vm1242_vm9 = vweird.f32 %v2099_v62  ;;  %v1229_v9 = vsel %vm2642_vm8, %v2097_v56, %v1225_v2 }
 0x659   : > { %2100 = vrcp.f32 %v1217_v1  ;;  %vm1243_vm12 = vmor %vm1241_vm10, %vm1242_vm9  ;;  %v1234_v22 = vsel %vm1231_vm11, %v1233_v11, %v1229_v9  ;;  %v1262_v32 = vand.u32 2147483648, %v1217_v1  ;;  %vm1256_vm15 = vweird.f32 %v1217_v1  ;;  %v1385_v9 = vld [vmem:[#allocation5 + $0x38] sm:$0xff] }
 0x65a   : > { %v1238_v4 = vsub.f32 1.0, %v1237_v0  ;;  %v1235_v18 = vmul.f32 %v2089_v42, %v1234_v22  ;;  %v1260_v33 = vand.u32 2147483647, %v1217_v1  ;;  %v1386_v0 = vld [vmem:[#allocation5 + $0x40] sm:$0xff] }
 0x65b   : > { %v1263_v51 = vor.u32 1.1754944e-38, %v1262_v32 }
 0x65c   : > { %v1239_v7 = vmul.f32 %v2099_v62, %v1238_v4  ;;  %vm1261_vm4 = vcmp.eq.f32.partialorder %v1260_v33, 8.507059e+37 }
 0x65e   : > { %v1240_v12 = vadd.f32 %v2099_v62, %v1239_v7 }
 0x65f   : > { %v2101_v13 = vpop.eup %2100 }
 0x660   : > { %v1244_v14 = vsel %vm1243_vm12, %v2099_v62, %v1240_v12  ;;  %v1252_v19 = vmul.f32 %v2101_v13, %v1217_v1  ;;  %v1220_v20 = vpop.xlane.xlu1 %1219  ;;  %vm1257_vm14 = vweird.f32 %v2101_v13  ;;  %v1387_v1 = vld [vmem:[#allocation5 + $0x48] sm:$0xff]  ;;  %v1397_v12 = vpack.c.bf16 %v1385_v9, %v1384_v8 }
 0x661   : > { %2102 = vrcp.f32 %v1220_v20  ;;  %v1249_v25 = vsel %vm1246_vm13, %v1248_v17, %v1244_v14  ;;  %vm1258_vm0 = vmor %vm1256_vm15, %vm1257_vm14  ;;  %v1277_v15 = vand.u32 2147483648, %v1220_v20  ;;  %v1275_v16 = vand.u32 2147483647, %v1220_v20  ;;  %v1382_v17 = vld [vmem:[#allocation5 + $0x20] sm:$0xff] }
 0x662   : > { %v1253_v23 = vsub.f32 1.0, %v1252_v19  ;;  %v1250_v21 = vmul.f32 %v2091_v47, %v1249_v25  ;;  %vm1271_vm6 = vweird.f32 %v1220_v20  ;;  %v1392_v47 = vld [vmem:[#allocation5 + $0x70] sm:$0xff]  ;;  %v1398_v5 = vpack.c.bf16 %v1387_v1, %v1386_v0  ;;  %v1383_v19 = vld [vmem:[#allocation5 + $0x28] sm:$0xff] }
 0x663   : > { %v1278_v38 = vor.u32 1.1754944e-38, %v1277_v15  ;;  %vm1276_vm8 = vcmp.eq.f32.partialorder %v1275_v16, 8.507059e+37  ;;  %v1401_v63 = vpack.c.bf16 %v1393_v36, %v1392_v47  ;;  %v2064_v36 = vld [vmem:[%s2812_s11] ss:$0 sm:$0xff] }
 0x664   : > { %v1254_v27 = vmul.f32 %v2101_v13, %v1253_v23  ;;  %v1281_v28 = vpack.c.bf16 %v1250_v21, %v1235_v18  ;;  %v1396_v23 = vpack.c.bf16 %v1383_v19, %v1382_v17  ;;  %v1380_v21 = vld [vmem:[#allocation5 + $0x10] sm:$0xff] }
 0x665   : > { %1402 = vmatpush.bf16.msra.mxu1 %v1401_v63 }
 0x666   : > { %1961 = vmatmul.msk.bf16.vlgmr.msrb.gmra.mxu2 %vm839_vm5, %v1281_v28  ;;  %v1255_v30 = vadd.f32 %v2101_v13, %v1254_v27  ;;  %v1381_v27 = vld [vmem:[#allocation5 + $0x18] sm:$0xff] }
 0x667   : > { %v2103_v29 = vpop.eup %2102  ;;  %v1395_v28 = vpack.c.bf16 %v1381_v27, %v1380_v21 }
 0x668   : > { %v1267_v31 = vmul.f32 %v2103_v29, %v1220_v20  ;;  %vm1272_vm1 = vweird.f32 %v2103_v29  ;;  %v1259_v35 = vsel %vm1258_vm0, %v2101_v13, %v1255_v30  ;;  %v1379_v30 = vld [vmem:[#allocation5 + $0x8] sm:$0xff] }
 0x669   : > { %vm1273_vm7 = vmor %vm1271_vm6, %vm1272_vm1  ;;  %v1264_v39 = vsel %vm1261_vm4, %v1263_v51, %v1259_v35  ;;  %1403 = vmatpush.bf16.msra.mxu1 %v1400_v52  ;;  %v2065_v52 = vld [vmem:[%s2813_s12] ss:$0 sm:$0xff] }
 0x66a   : > { %v1268_v45 = vsub.f32 1.0, %v1267_v31  ;;  %v1265_v42 = vmul.f32 %v2634_v24, %v1264_v39 }
 0x66c   : > { %v1269_v34 = vmul.f32 %v2103_v29, %v1268_v45 }
 0x66e   : > { %v1270_v37 = vadd.f32 %v2103_v29, %v1269_v34 }
 0x670   : > { %v1274_v40 = vsel %vm1273_vm7, %v2103_v29, %v1270_v37  ;;  %v1378_v29 = vld [vmem:[#allocation5] sm:$0xff] }
 0x671   : > { %v1279_v41 = vsel %vm1276_vm8, %v1278_v38, %v1274_v40  ;;  %v1394_v15 = vpack.c.bf16 %v1379_v30, %v1378_v29 }
 0x672   : > { %v1280_v57 = vmul.f32 %v2638_v53, %v1279_v41  ;;  %v1388_v53 = vld [vmem:[#allocation5 + $0x50] sm:$0xff] }
 0x673   : > { %v1399_v59 = vpack.c.bf16 %v1389_v54, %v1388_v53 }
 0x674   : > { %v1282_v43 = vpack.c.bf16 %v1280_v57, %v1265_v42 }
 0x675   : > { %1404 = vmatpush.bf16.msra.mxu1 %v1399_v59 }
 0x676   : > { %1962 = vmatmul.msk.bf16.gmra.mxu2 %vm839_vm5, %v1282_v43 }
 0x679   : > { %1405 = vmatpush.bf16.msra.mxu1 %v1398_v5 }
 0x67d   : > { %1406 = vmatpush.bf16.msra.mxu1 %v1397_v12 }
 0x681   : > { %1407 = vmatpush.bf16.msra.mxu1 %v1396_v23 }
 0x685   : > { %1408 = vmatpush.bf16.msra.mxu1 %v1395_v28 }
 0x689   : > { %1409 = vmatpush.bf16.msra.mxu1 %v1394_v15 }
 0x6e9   : > { %v2652_v44 = vpop.f32.mrf.mxu2 }
 0x6ea   : > { %v1319_v55 = vmul.f32 %v2652_v44, %v2652_v44 }
 0x6f1   : > { %v2654_v46 = vpop.f32.mrf.mxu2 }
 0x6f2   : > { %v1320_v24 = vmul.f32 %v2654_v46, %v2654_v46  ;;  %v1310_v56 = vadd.f32 %v2654_v46, %v2652_v44 }
 0x6f4   : > { %v1323_v60 = vadd.f32 %v1320_v24, %v1319_v55 }
 0x6f9   : > { %v2656_v48 = vpop.f32.mrf.mxu2 }
 0x6fa   : > { %v1321_v58 = vmul.f32 %v2656_v48, %v2656_v48  ;;  %v1311_v61 = vadd.f32 %v1310_v56, %v2656_v48 }
 0x6fc   : > { %v1324_v2 = vadd.f32 %v1323_v60, %v1321_v58 }
 0x701   : > { %v2667_v62 = vpop.f32.mrf.mxu2 }
 0x702   : > { %v1312_v3 = vadd.f32 %v1311_v61, %v2667_v62  ;;  %v1322_v4 = vmul.f32 %v2667_v62, %v2667_v62 }
 0x704   : > { %v1313_v6 = vrot.slane %v1312_v3, 4  ;;  %v1325_v7 = vadd.f32 %v1324_v2, %v1322_v4 }
 0x706   : > { %v1314_v10 = vadd.f32 %v1313_v6, %v1312_v3  ;;  %v1326_v11 = vrot.slane %v1325_v7, 4 }
 0x708   : > { %v1315_v13 = vrot.slane %v1314_v10, 2  ;;  %v1327_v14 = vadd.f32 %v1326_v11, %v1325_v7 }
 0x70a   : > { %v1316_v20 = vadd.f32 %v1315_v13, %v1314_v10  ;;  %v1328_v22 = vrot.slane %v1327_v14, 2 }
 0x70c   : > { %v1317_v25 = vrot.slane %v1316_v20, 1  ;;  %v1329_v18 = vadd.f32 %v1328_v22, %v1327_v14 }
 0x70e   : > { %v1318_v31 = vadd.f32 %v1317_v25, %v1316_v20  ;;  %v1330_v32 = vrot.slane %v1329_v18, 1 }
 0x710   : > { %v1331_v33 = vadd.f32 %v1330_v32, %v1329_v18  ;;  %v1332_v45 = vmul.f32 0.03125, %v1318_v31 }
 0x712   : > { %v1333_v34 = vmul.f32 0.03125, %v1331_v33  ;;  %v1334_v16 = vmul.f32 %v1332_v45, %v1332_v45  ;;  %v1337_v43 = vsub.f32 %v2652_v44, %v1332_v45  ;;  %v1338_v47 = vsub.f32 %v2654_v46, %v1332_v45 }
 0x713   : > { %v1340_v44 = vsub.f32 %v2667_v62, %v1332_v45  ;;  %v1339_v58 = vsub.f32 %v2656_v48, %v1332_v45  ;;  %v2066_v62 = vld [vmem:[%s2815_s14] ss:$0 sm:$0xff] }
 0x714   : > { %v1335_v35 = vsub.f32 %v1333_v34, %v1334_v16  ;;  %v2067_v48 = vld [vmem:[%s2816_s15] ss:$0 sm:$0xff] }
 0x716   : > { %v1336_v51 = vmax.f32 %v1335_v35, 0.0 }
 0x718   : > { %v1341_v37 = vadd.f32 1e-05, %v1336_v51 }
 0x71a   : > { %2104 = vrsqrt.f32 %v1341_v37  ;;  %vm1348_vm10 = vweird.f32 %v1341_v37 }
 0x720   : > { %v2105_v38 = vpop.eup %2104 }
 0x721   : > { %v1343_v39 = vmul.f32 %v2105_v38, %v1341_v37  ;;  %vm1349_vm9 = vweird.f32 %v2105_v38 }
 0x722   : > { %vm1350_vm11 = vmor %vm1348_vm10, %vm1349_vm9 }
 0x723   : > { %v1344_v40 = vmul.f32 %v2105_v38, %v1343_v39 }
 0x725   : > { %v1345_v41 = vmul.f32 0.5, %v1344_v40 }
 0x727   : > { %v1346_v42 = vsub.f32 1.5, %v1345_v41 }
 0x729   : > { %v1347_v57 = vmul.f32 %v2105_v38, %v1346_v42 }
 0x72b   : > { %v1351_v63 = vsel %vm1350_vm11, %v2105_v38, %v1347_v57 }
 0x72c   : > { %v1352_v49 = vmul.f32 %v1351_v63, %v1337_v43  ;;  %v1353_v50 = vmul.f32 %v1351_v63, %v1338_v47  ;;  %v1355_v59 = vmul.f32 %v1351_v63, %v1340_v44  ;;  %v1354_v61 = vmul.f32 %v1351_v63, %v1339_v58  ;;  %v2124_v43 = vld [vmem:[%s2522_s27 + $0x8] sm:$0xff]  ;;  %v2127_v58 = vld [vmem:[%s2522_s27 + $0x18] sm:$0xff] }
 0x72e   : > { %v1360_v24 = vmul.f32 %v2064_v36, %v1352_v49  ;;  %v1361_v53 = vmul.f32 %v2064_v36, %v1353_v50  ;;  %v1362_v0 = vmul.f32 %v2064_v36, %v1354_v61  ;;  %v1363_v1 = vmul.f32 %v2064_v36, %v1355_v59  ;;  %v2125_v36 = vld [vmem:[%s2522_s27] sm:$0xff] }
 0x730   : > { %v1368_v54 = vadd.f32 %v2065_v52, %v1360_v24  ;;  %v1369_v55 = vadd.f32 %v2065_v52, %v1361_v53  ;;  %v1370_v2 = vadd.f32 %v2065_v52, %v1362_v0  ;;  %v1371_v3 = vadd.f32 %v2065_v52, %v1363_v1  ;;  %v2126_v53 = vld [vmem:[%s2522_s27 + $0x10] sm:$0xff]  ;;  %s682_s27 = scalar_lea.vmem %s2857_s28, %s1940_s29  ;;  %s1751_s29 = scalar_lea.sflag [#allocation4], %s2742_s2 }
 0x731   : > { %s2204_s28 = scalar_lea.hbm %s2203_s24, 32 }
 0x732   : > { %v1372_v56 = vmax.f32 %v1368_v54, 0.0  ;;  %v1373_v46 = vmax.f32 %v1369_v55, 0.0  ;;  %v1374_v4 = vmax.f32 %v1370_v2, 0.0  ;;  %v1375_v5 = vmax.f32 %v1371_v3, 0.0  ;;  %p2205_p0 = scmp.ne.s32.totalorder %s2203_s24, %s2204_s28 }
 0x734   : > { %v1376_v60 = vpack.c.bf16 %v1373_v46, %v1372_v56  ;;  %v1377_v6 = vpack.c.bf16 %v1375_v5, %v1374_v4  ;;  %p2206_p1 = pnand %p2205_p0, %p2436_p5 }
 0x736   : > { %1410 = vmatmul.bf16.vlgmr.msra.gmra.mxu1 %v1376_v60  ;;  %p2207_p2 = pneg %p2206_p1 }
 0x746   : > { %1415 = vmatmul.bf16.gmra.mxu1 %v1377_v6 }
 0x7b3   : > { %v1411_v7 = vpop.f32.mrf.mxu1 }
 0x7b4   : > { %v1425_v17 = vmul.f32 %v2067_v48, %v1411_v7  ;;  %v1441_v23 = vmul.f32 %v2066_v62, %v1411_v7 }
 0x7bb   : > { %v1413_v8 = vpop.f32.mrf.mxu1 }
 0x7bc   : > { %v1442_v9 = vmul.f32 %v2066_v62, %v1413_v8  ;;  %v1426_v11 = vmul.f32 %v2067_v48, %v1413_v8  ;;  %v1628_v20 = vpack.c.bf16 %v1413_v8, %v1411_v7 }
 0x7be   : > { %1447 = vadd.xlane.f32.xlu1 %v1442_v9 }
 0x7c3   : > { %v1416_v10 = vpop.f32.mrf.mxu1 }
 0x7c4   : > { %v1443_v12 = vmul.f32 %v2066_v62, %v1416_v10  ;;  %v1427_v25 = vmul.f32 %v2067_v48, %v1416_v10 }
 0x7c6   : > { %1431 = vadd.xlane.f32.xlu1 %v1426_v11  ;;  %1449 = vadd.xlane.f32.xlu0 %v1443_v12 }
 0x7cb   : > { %v1418_v13 = vpop.f32.mrf.mxu1 }
 0x7cc   : > { %v1629_v14 = vpack.c.bf16 %v1418_v13, %v1416_v10  ;;  %v1444_v19 = vmul.f32 %v2066_v62, %v1418_v13  ;;  %v1428_v22 = vmul.f32 %v2067_v48, %v1418_v13 }
 0x7ce   : > { %1429 = vadd.xlane.f32.xlu0 %v1425_v17  ;;  %1642 = vmatpush.bf16.msra.mxu0 %v1629_v14 }
 0x7cf   : > { %1451 = vadd.xlane.f32.xlu2 %v1444_v19 }
 0x7d2   : > { %1643 = vmatpush.bf16.msra.mxu0 %v1628_v20 }
 0x7d6   : > { %1435 = vadd.xlane.f32.xlu0 %v1428_v22 }
 0x7d7   : > { %1445 = vadd.xlane.f32.xlu2 %v1441_v23 }
 0x7df   : > { %1433 = vadd.xlane.f32.xlu2 %v1427_v25 }
 0x831   : > { %v1448_v28 = vpop.xlane.xlu1 %1447 }
 0x832   : > { %v1458_v30 = vsel %vm760_vm2, 1.0, %v1448_v28 }
 0x839   : > { %v1450_v27 = vpop.xlane.xlu0 %1449  ;;  %v1432_v32 = vpop.xlane.xlu1 %1431 }
 0x83a   : > { %v1459_v29 = vsel %vm760_vm2, 1.0, %v1450_v27  ;;  %v1454_v15 = vsel %vm760_vm2, %v1432_v32, 1.0 }
 0x841   : > { %v1430_v33 = vpop.xlane.xlu0 %1429 }
 0x842   : > { %v1452_v18 = vpop.xlane.xlu2 %1451  ;;  %v1453_v34 = vsel %vm760_vm2, %v1430_v33, 1.0 }
 0x843   : > { %v1460_v21 = vsel %vm760_vm2, 1.0, %v1452_v18 }
 0x844   : > { %1963 = vmatpush.xpose.msk.msra.mxu2 %vm769_vm3, %v1460_v21  ;;  %1985 = vmatpush.xpose.msk.msrb.mxu3 %vm769_vm3, %v1460_v21 }
 0x848   : > { %1964 = vmatpush.xpose.msk.msra.mxu2 %vm769_vm3, %v1459_v29  ;;  %1986 = vmatpush.xpose.msk.msrb.mxu3 %vm769_vm3, %v1459_v29 }
 0x849   : > { %v1436_v51 = vpop.xlane.xlu0 %1435 }
 0x84a   : > { %v1446_v31 = vpop.xlane.xlu2 %1445  ;;  %v1456_v37 = vsel %vm760_vm2, %v1436_v51, 1.0 }
 0x84b   : > { %v1457_v45 = vsel %vm760_vm2, 1.0, %v1446_v31 }
 0x84c   : > { %1965 = vmatpush.xpose.msk.msra.mxu2 %vm769_vm3, %v1458_v30  ;;  %1987 = vmatpush.xpose.msk.msrb.mxu3 %vm769_vm3, %v1458_v30 }
 0x850   : > { %1966 = vmatpush.xpose.msk.msra.mxu2 %vm769_vm3, %v1457_v45  ;;  %1988 = vmatpush.xpose.msk.msrb.mxu3 %vm769_vm3, %v1457_v45 }
 0x852   : > { %v1434_v16 = vpop.xlane.xlu2 %1433 }
 0x853   : > { %1967 = vmatmul.msk.f32.vlgmr.msra.gmra.mxu2 %vm769_vm3, %v1453_v34  ;;  %1968 = vmatmul.msk.f32.vlgmr.msrb.gmra.mxu3 %vm769_vm3, %v1454_v15  ;;  %v1455_v35 = vsel %vm760_vm2, %v1434_v16, 1.0 }
 0x85b   : > { %1969 = vmatmul.msk.f32.gmra.mxu3 %vm769_vm3, %v1455_v35 }
 0x863   : > { %1970 = vmatmul.msk.f32.gmra.mxu3 %vm769_vm3, %v1456_v37 }
 0x8d6   : > { %v1502_v38 = vpop.f32.mrf.mxu2  ;;  %v1505_v39 = vpop.f32.mrf.mxu3 }
 0x8d7   : > { %vm1514_vm12 = vcmp.gt.f32.partialorder %v1502_v38, 0.0  ;;  %v1518_v40 = vmul.f32 0.2, %v1502_v38  ;;  %vm1515_vm13 = vcmp.gt.f32.partialorder %v1505_v39, 0.0  ;;  %v1519_v41 = vmul.f32 0.2, %v1505_v39 }
 0x8d9   : > { %v1523_v42 = vsel %vm1515_vm13, %v1505_v39, %v1519_v41  ;;  %v1522_v57 = vsel %vm1514_vm12, %v1502_v38, %v1518_v40 }
 0x8da   : > { %v1527_v47 = vadd.f32 %v2124_v43, %v1523_v42  ;;  %v1526_v63 = vadd.f32 %v2125_v36, %v1522_v57 }
 0x8dc   : > { %v1533_v49 = vsel %vm839_vm5, %v1527_v47, -inf  ;;  %v1530_v26 = vsel %vm839_vm5, %v1526_v63, -inf }
 0x8dd   : > { %1534 = vmax.xlane.f32.xlu2 %v1533_v49  ;;  %1531 = vmax.xlane.f32.xlu1 %v1530_v26 }
 0x8de   : > { %v1508_v50 = vpop.f32.mrf.mxu3 }
 0x8df   : > { %vm1516_vm2 = vcmp.gt.f32.partialorder %v1508_v50, 0.0  ;;  %v1520_v52 = vmul.f32 0.2, %v1508_v50 }
 0x8e1   : > { %v1524_v24 = vsel %vm1516_vm2, %v1508_v50, %v1520_v52 }
 0x8e2   : > { %v1528_v54 = vadd.f32 %v2126_v53, %v1524_v24 }
 0x8e4   : > { %v1536_v55 = vsel %vm839_vm5, %v1528_v54, -inf }
 0x8e5   : > { %1537 = vmax.xlane.f32.xlu0 %v1536_v55 }
 0x8e6   : > { %v1511_v44 = vpop.f32.mrf.mxu3 }
 0x8e7   : > { %vm1517_vm3 = vcmp.gt.f32.partialorder %v1511_v44, 0.0  ;;  %v1521_v56 = vmul.f32 0.2, %v1511_v44 }
 0x8e9   : > { %v1525_v46 = vsel %vm1517_vm3, %v1511_v44, %v1521_v56 }
 0x8ea   : > { %v1529_v59 = vadd.f32 %v2127_v58, %v1525_v46 }
 0x8ec   : > { %v1539_v60 = vsel %vm839_vm5, %v1529_v59, -inf }
 0x8ed   : > { %1540 = vmax.xlane.f32.xlu1 %v1539_v60 }
 0x950   : > { %v1532_v61 = vpop.xlane.xlu1 %1531  ;;  %v1535_v0 = vpop.xlane.xlu2 %1534 }
 0x951   : > { %v1542_v1 = vsub.f32 %v1526_v63, %v1532_v61  ;;  %v1543_v2 = vsub.f32 %v1527_v47, %v1535_v0 }
 0x953   : > { %v1546_v3 = vmul.f32 1.442695, %v1542_v1  ;;  %v1548_v4 = vmul.f32 1.442695, %v1543_v2 }
 0x955   : > { %2106 = vpow2.f32 %v1546_v3 }
 0x956   : > { %2108 = vpow2.f32 %v1548_v4 }
 0x958   : > { %v1538_v5 = vpop.xlane.xlu0 %1537 }
 0x959   : > { %v1544_v6 = vsub.f32 %v1528_v54, %v1538_v5 }
 0x95b   : > { %v2107_v7 = vpop.eup %2106  ;;  %v1550_v62 = vmul.f32 1.442695, %v1544_v6 }
 0x95c   : > { %v2109_v8 = vpop.eup %2108  ;;  %v1554_v9 = vsel %vm839_vm5, %v2107_v7, 0.0 }
 0x95d   : > { %2110 = vpow2.f32 %v1550_v62  ;;  %1555 = vadd.xlane.f32.xlu2 %v1554_v9  ;;  %v1557_v48 = vsel %vm839_vm5, %v2109_v8, 0.0 }
 0x95e   : > { %1558 = vadd.xlane.f32.xlu0 %v1557_v48 }
 0x960   : > { %v1541_v10 = vpop.xlane.xlu1 %1540 }
 0x961   : > { %v1545_v11 = vsub.f32 %v1529_v59, %v1541_v10 }
 0x963   : > { %v2726_v12 = vpop.eup %2110  ;;  %v1552_v13 = vmul.f32 1.442695, %v1545_v11 }
 0x964   : > { %v1560_v14 = vsel %vm839_vm5, %v2726_v12, 0.0 }
 0x965   : > { %2112 = vpow2.f32 %v1552_v13  ;;  %1561 = vadd.xlane.f32.xlu1 %v1560_v14 }
 0x96b   : > { %v2730_v17 = vpop.eup %2112 }
 0x96c   : > { %v1563_v19 = vsel %vm839_vm5, %v2730_v17, 0.0 }
 0x96d   : > { %1564 = vadd.xlane.f32.xlu2 %v1563_v19 }
 0x9d0   : > { %v1556_v20 = vpop.xlane.xlu2 %1555 }
 0x9d1   : > { %2114 = vrcp.f32 %v1556_v20  ;;  %v1559_v22 = vpop.xlane.xlu0 %1558  ;;  %v1577_v29 = vand.u32 2147483648, %v1556_v20  ;;  %v1575_v32 = vand.u32 2147483647, %v1556_v20  ;;  %vm1571_vm0 = vweird.f32 %v1556_v20 }
 0x9d2   : > { %2116 = vrcp.f32 %v1559_v22  ;;  %v1592_v33 = vand.u32 2147483648, %v1559_v22  ;;  %v1590_v15 = vand.u32 2147483647, %v1559_v22  ;;  %vm1586_vm4 = vweird.f32 %v1559_v22 }
 0x9d3   : > { %v1578_v35 = vor.u32 1.1754944e-38, %v1577_v29  ;;  %vm1576_vm6 = vcmp.eq.f32.partialorder %v1575_v32, 8.507059e+37 }
 0x9d4   : > { %v1593_v38 = vor.u32 1.1754944e-38, %v1592_v33  ;;  %vm1591_vm8 = vcmp.eq.f32.partialorder %v1590_v15, 8.507059e+37 }
 0x9d7   : > { %v2115_v23 = vpop.eup %2114 }
 0x9d8   : > { %v2117_v25 = vpop.eup %2116  ;;  %v1567_v18 = vmul.f32 %v2115_v23, %v1556_v20  ;;  %v1562_v21 = vpop.xlane.xlu1 %1561  ;;  %vm1572_vm14 = vweird.f32 %v2115_v23 }
 0x9d9   : > { %v1582_v27 = vmul.f32 %v2117_v25, %v1559_v22  ;;  %2118 = vrcp.f32 %v1562_v21  ;;  %vm1587_vm15 = vweird.f32 %v2117_v25  ;;  %vm1573_vm1 = vmor %vm1571_vm0, %vm1572_vm14  ;;  %v1607_v24 = vand.u32 2147483648, %v1562_v21 }
 0x9da   : > { %v1568_v28 = vsub.f32 1.0, %v1567_v18  ;;  %vm1588_vm7 = vmor %vm1586_vm4, %vm1587_vm15  ;;  %vm1601_vm10 = vweird.f32 %v1562_v21  ;;  %v1605_v53 = vand.u32 2147483647, %v1562_v21 }
 0x9db   : > { %v1583_v30 = vsub.f32 1.0, %v1582_v27  ;;  %v1608_v58 = vor.u32 1.1754944e-38, %v1607_v24 }
 0x9dc   : > { %v1569_v31 = vmul.f32 %v2115_v23, %v1568_v28  ;;  %vm1606_vm13 = vcmp.eq.f32.partialorder %v1605_v53, 8.507059e+37 }
 0x9dd   : > { %v1584_v45 = vmul.f32 %v2117_v25, %v1583_v30 }
 0x9de   : > { %v1570_v34 = vadd.f32 %v2115_v23, %v1569_v31 }
 0x9df   : > { %v2119_v16 = vpop.eup %2118  ;;  %v1585_v51 = vadd.f32 %v2117_v25, %v1584_v45 }
 0x9e0   : > { %v1574_v37 = vsel %vm1573_vm1, %v2115_v23, %v1570_v34  ;;  %v1597_v39 = vmul.f32 %v2119_v16, %v1562_v21  ;;  %v1565_v40 = vpop.xlane.xlu2 %1564  ;;  %vm1602_vm9 = vweird.f32 %v2119_v16 }
 0x9e1   : > { %v1579_v41 = vsel %vm1576_vm6, %v1578_v35, %v1574_v37  ;;  %v1589_v42 = vsel %vm1588_vm7, %v2117_v25, %v1585_v51  ;;  %2120 = vrcp.f32 %v1565_v40  ;;  %vm1603_vm11 = vmor %vm1601_vm10, %vm1602_vm9  ;;  %v1622_v55 = vand.u32 2147483648, %v1565_v40 }
 0x9e2   : > { %v1580_v57 = vmul.f32 %v2107_v7, %v1579_v41  ;;  %v1594_v43 = vsel %vm1591_vm8, %v1593_v38, %v1589_v42  ;;  %v1598_v47 = vsub.f32 1.0, %v1597_v39  ;;  %v1620_v46 = vand.u32 2147483647, %v1565_v40 }
 0x9e3   : > { %v1595_v36 = vmul.f32 %v2109_v8, %v1594_v43  ;;  %vm1616_vm2 = vweird.f32 %v1565_v40  ;;  %v1623_v60 = vor.u32 1.1754944e-38, %v1622_v55 }
 0x9e4   : > { %v1599_v63 = vmul.f32 %v2119_v16, %v1598_v47  ;;  %vm1621_vm14 = vcmp.eq.f32.partialorder %v1620_v46, 8.507059e+37 }
 0x9e5   : > { %v1626_v49 = vpack.c.bf16 %v1595_v36, %v1580_v57  ;;  %v2068_v57 = vld [vmem:[%s2817_s16] ss:$0 sm:$0xff] }
 0x9e6   : > { %v1600_v50 = vadd.f32 %v2119_v16, %v1599_v63 }
 0x9e7   : > { %v2121_v26 = vpop.eup %2120  ;;  %1971 = vmatmul.msk.bf16.vlgmr.msra.gmra.mxu0 %vm839_vm5, %v1626_v49 }
 0x9e8   : > { %v1612_v52 = vmul.f32 %v2121_v26, %v1565_v40  ;;  %v1604_v44 = vsel %vm1603_vm11, %v2119_v16, %v1600_v50  ;;  %vm1617_vm12 = vweird.f32 %v2121_v26 }
 0x9e9   : > { %vm1618_vm3 = vmor %vm1616_vm2, %vm1617_vm12  ;;  %v1609_v61 = vsel %vm1606_vm13, %v1608_v58, %v1604_v44 }
 0x9ea   : > { %v1613_v54 = vsub.f32 1.0, %v1612_v52  ;;  %v1610_v2 = vmul.f32 %v2726_v12, %v1609_v61 }
 0x9ec   : > { %v1614_v56 = vmul.f32 %v2121_v26, %v1613_v54 }
 0x9ee   : > { %v1615_v59 = vadd.f32 %v2121_v26, %v1614_v56 }
 0x9f0   : > { %v1619_v0 = vsel %vm1618_vm3, %v2121_v26, %v1615_v59  ;;  %v2069_v26 = vld [vmem:[%s2818_s17] ss:$0 sm:$0xff] }
 0x9f1   : > { %v1624_v1 = vsel %vm1621_vm14, %v1623_v60, %v1619_v0 }
 0x9f2   : > { %v1625_v3 = vmul.f32 %v2730_v17, %v1624_v1 }
 0x9f4   : > { %v1627_v4 = vpack.c.bf16 %v1625_v3, %v1610_v2  ;;  %v1725_v2 = vld [vmem:[%s682_s27] sm:$0x3] }
 0x9f7   : > { %1972 = vmatmul.msk.bf16.gmra.mxu0 %vm839_vm5, %v1627_v4 }
 0xa64   : > { %v1645_v5 = vpop.f32.mrf.mxu0 }
 0xa65   : > { %v1664_v8 = vmul.f32 %v1645_v5, %v1645_v5 }
 0xa6c   : > { %v1647_v6 = vpop.f32.mrf.mxu0 }
 0xa6d   : > { %v1665_v62 = vmul.f32 %v1647_v6, %v1647_v6  ;;  %v1655_v9 = vadd.f32 %v1647_v6, %v1645_v5 }
 0xa6f   : > { %v1668_v10 = vadd.f32 %v1665_v62, %v1664_v8 }
 0xa74   : > { %v1650_v7 = vpop.f32.mrf.mxu0 }
 0xa75   : > { %v1666_v48 = vmul.f32 %v1650_v7, %v1650_v7  ;;  %v1656_v11 = vadd.f32 %v1655_v9, %v1650_v7 }
 0xa77   : > { %v1669_v14 = vadd.f32 %v1668_v10, %v1666_v48 }
 0xa7c   : > { %v1652_v13 = vpop.f32.mrf.mxu0 }
 0xa7d   : > { %v1657_v19 = vadd.f32 %v1656_v11, %v1652_v13  ;;  %v1667_v20 = vmul.f32 %v1652_v13, %v1652_v13 }
 0xa7f   : > { %v1658_v22 = vrot.slane %v1657_v19, 4  ;;  %v1670_v12 = vadd.f32 %v1669_v14, %v1667_v20 }
 0xa81   : > { %v1659_v23 = vadd.f32 %v1658_v22, %v1657_v19  ;;  %v1671_v17 = vrot.slane %v1670_v12, 4 }
 0xa83   : > { %v1660_v25 = vrot.slane %v1659_v23, 2  ;;  %v1672_v18 = vadd.f32 %v1671_v17, %v1670_v12 }
 0xa85   : > { %v1661_v21 = vadd.f32 %v1660_v25, %v1659_v23  ;;  %v1673_v27 = vrot.slane %v1672_v18, 2 }
 0xa87   : > { %v1662_v28 = vrot.slane %v1661_v21, 1  ;;  %v1674_v29 = vadd.f32 %v1673_v27, %v1672_v18 }
 0xa89   : > { %v1663_v30 = vadd.f32 %v1662_v28, %v1661_v21  ;;  %v1675_v31 = vrot.slane %v1674_v29, 1 }
 0xa8b   : > { %v1676_v32 = vadd.f32 %v1675_v31, %v1674_v29  ;;  %v1677_v33 = vmul.f32 0.03125, %v1663_v30 }
 0xa8d   : > { %v1678_v45 = vmul.f32 0.03125, %v1676_v32  ;;  %v1679_v15 = vmul.f32 %v1677_v33, %v1677_v33  ;;  %v1685_v42 = vsub.f32 %v1652_v13, %v1677_v33  ;;  %v1684_v43 = vsub.f32 %v1650_v7, %v1677_v33 }
 0xa8e   : > { %v1683_v47 = vsub.f32 %v1647_v6, %v1677_v33  ;;  %v1682_v36 = vsub.f32 %v1645_v5, %v1677_v33 }
 0xa8f   : > { %v1680_v34 = vsub.f32 %v1678_v45, %v1679_v15 }
 0xa91   : > { %v1681_v16 = vmax.f32 %v1680_v34, 0.0 }
 0xa93   : > { %v1686_v35 = vadd.f32 1e-05, %v1681_v16 }
 0xa95   : > { %2122 = vrsqrt.f32 %v1686_v35  ;;  %vm1693_vm0 = vweird.f32 %v1686_v35 }
 0xa9b   : > { %v2123_v51 = vpop.eup %2122 }
 0xa9c   : > { %v1688_v37 = vmul.f32 %v2123_v51, %v1686_v35  ;;  %vm1694_vm15 = vweird.f32 %v2123_v51 }
 0xa9d   : > { %vm1695_vm1 = vmor %vm1693_vm0, %vm1694_vm15 }
 0xa9e   : > { %v1689_v38 = vmul.f32 %v2123_v51, %v1688_v37 }
 0xaa0   : > { %v1690_v39 = vmul.f32 0.5, %v1689_v38 }
 0xaa2   : > { %v1691_v40 = vsub.f32 1.5, %v1690_v39 }
 0xaa4   : > { %v1692_v41 = vmul.f32 %v2123_v51, %v1691_v40 }
 0xaa6   : > { %v1696_v63 = vsel %vm1695_vm1, %v2123_v51, %v1692_v41 }
 0xaa7   : > { %v1700_v49 = vmul.f32 %v1696_v63, %v1685_v42  ;;  %v1699_v50 = vmul.f32 %v1696_v63, %v1684_v43  ;;  %v1698_v52 = vmul.f32 %v1696_v63, %v1683_v47  ;;  %v1697_v24 = vmul.f32 %v1696_v63, %v1682_v36 }
 0xaa9   : > { %v1708_v53 = vmul.f32 %v2068_v57, %v1700_v49  ;;  %v1707_v54 = vmul.f32 %v2068_v57, %v1699_v50  ;;  %v1706_v55 = vmul.f32 %v2068_v57, %v1698_v52  ;;  %v1705_v44 = vmul.f32 %v2068_v57, %v1697_v24 }
 0xaab   : > { %v1716_v56 = vadd.f32 %v2069_v26, %v1708_v53  ;;  %v1715_v46 = vadd.f32 %v2069_v26, %v1707_v54  ;;  %v1714_v58 = vadd.f32 %v2069_v26, %v1706_v55  ;;  %v1713_v59 = vadd.f32 %v2069_v26, %v1705_v44 }
 0xaad   : > { %v1720_v60 = vmax.f32 %v1716_v56, 0.0  ;;  %v1719_v61 = vmax.f32 %v1715_v46, 0.0  ;;  %v1718_v0 = vmax.f32 %v1714_v58, 0.0  ;;  %v1717_v1 = vmax.f32 %v1713_v59, 0.0 }
 0xaaf   : > { %1741 = vmatpush.msrb.mxu2 %v1720_v60  ;;  %1721 = vst [vmem:[%s661_s22] sm:$0xff] %v1717_v1 }
 0xab0   : > { %1722 = vst [vmem:[%s661_s22 + $0x8] sm:$0xff] %v1718_v0 }
 0xab1   : > { %1742 = vmatpush.msrb.mxu2 %v1719_v61  ;;  %1723 = vst [vmem:[%s661_s22 + $0x10] sm:$0xff] %v1719_v61 }
 0xab2   : > { %1724 = vst [vmem:[%s661_s22 + $0x18] sm:$0xff] %v1720_v60  ;;  %s2208_s22 = scalar_lea.hbm %s2819_s18, 128 }
 0xab3   : > { %1743 = vmatpush.msrb.mxu2 %v1718_v0  ;;  %p2210_p4 = scmp.lt.s32.totalorder %s2208_s22, %s2204_s28 }
 0xab5   : > { %1744 = vmatpush.msrb.mxu2 %v1717_v1  ;;  %p2211_p7 = por %p2210_p4, %p2209_p3 }
 0xab6   : > { %1973 = vmatmul.msk.f32.vlgmr.msrb.gmra.mxu2 %vm839_vm5, %v1725_v2 }
 0xab7   : > { %p2212_p8 = pnand %p2211_p7, %p2207_p2 }
 0xab9   : > { %2215 = shalt.err (!%p2212_p8)
}
 0xaba   : > { %s2296_s20 = smov 128   ;;  %s2297_s25 = smov 8  }
 0xabb   : > { %1997 = dma.vmem_to_hbm [thread:$0]  (%p2436_p5), %s1769_s21, 512, %s1771_s23, %s1751_s29, %s2296_s20, %s2296_s20, %s2297_s25  }
 0xabc   : > { %s1935_s26 = sshll.u32 %s2742_s2, 1  ;;  %s1978_s4 = sshll.u32 %s2419_s1, 1 }
 0xabd   : > { %s1783_s5 = scalar_lea.hbm %s2820_s19, %s1978_s4  ;;  %s668_s6 = scalar_lea.vmem [#allocation8], %s1935_s26 }
 0xabe   : > { %s1785_s24 = sshll.u32 %s668_s6, 4  ;;  %s1787_s28 = sshll.u32 %s1783_s5, 4  ;;  %s1786_s24 = int_to_ptr.vmem [resolvable:$true] %s1785_s24  ;;  %s1788_s28 = int_to_ptr.hbm [resolvable:$true] %s1787_s28 }
 0xabf   : > { %s1756_s22 = scalar_lea.sflag [#allocation9], %s2742_s2  ;;  %s2230_s7 = sshra.s32 %s1788_s28, 4  ;;  %s2231_s7 = int_to_ptr.hbm [resolvable:$true] %s2230_s7 }
 0xac0   : > { %s2232_s8 = scalar_lea.hbm %s2231_s7, 2  ;;  %s2236_s23 = scalar_lea.hbm %s2820_s19, 8 }
 0xac1   : > { %p2233_p9 = scmp.ne.s32.totalorder %s2231_s7, %s2232_s8  ;;  %p2237_p12 = scmp.lt.s32.totalorder %s2231_s7, %s2820_s19 }
 0xac2   : > { %p2238_p13 = scmp.lt.s32.totalorder %s2236_s23, %s2232_s8 }
 0xac3   : > { %p2234_p10 = pnand %p2233_p9, %p2436_p5 }
 0xac4   : > { %p2239_p0 = por %p2238_p13, %p2237_p12 }
 0xac5   : > { %p2235_p11 = pneg %p2234_p10 }
 0xac7   : > { %p2240_p1 = pnand %p2239_p0, %p2235_p11 }
 0xb39   : > { %v1746_v3 = vpop.f32.mrf.mxu2 }
 0xb3a   : > { %1749 = vst [vmem:[%s668_s6] sm:$0x3] %v1746_v3 }
 0xb3b   : > { %2243 = shalt.err (!%p2240_p1)
}
 0xb3c   : > { %1998 = dma.vmem_to_hbm [thread:$0]  (%p2436_p5), %s1786_s24, 32, %s1788_s28, %s1756_s22  }
 0xb3d PF: > { %s2858_s2 = sld [smem:[#allocation16_spill]] }
 0xb3e   : > { %s2859_s25 = sld [smem:[#allocation14_spill]] }
 0xb43   : > { %p2019_p2 = scmp.ge.s32.totalorder %s2858_s2, 2 }
 0xb44   : > { %s1799_s4 = sand.u32 1, %s2859_s25  }
 0xb45   : > { %p2009_p3 = pnand %p2019_p2, %p2440_p6  ;;  %s1800_s0 = scalar_lea.sflag [#allocation4], %s1799_s4 }
 0xb47   : > { %p2010_p4 = pneg %p2009_p3 }
 0xb49   : > { %2269 = dma.done.wait (%p2010_p4), %s1800_s0, 512  }
 0xb4a   : > { %2271 = vsyncadd (%p2010_p4), %s1800_s0, 4294966784  ;;  %s1810_s7 = scalar_lea.sflag [#allocation9], %s1799_s4 }
 0xb4b   : > { %2273 = dma.done.wait (%p2010_p4), %s1810_s7, 32  }
 0xb4c   : > { %2275 = vsyncadd (%p2010_p4), %s1810_s7, 4294967264  ;;  %s2861_s21 = sld [smem:[#allocation17_spill]]  ;;  %s2864_s0 = smov %s2282_s30 }
 0xb4d   : > { %s2862_s8 = sld [smem:[#allocation15_spill]] }
 0xb4e   : > { %s2863_s20 = sld [smem:[#allocation18_spill]] }
 0xb52   : > { %p35_p5 = scmp.ge.s32.totalorder %s2861_s21, 6  }
 0xb53   : > { %s2865_s30 = smov %s2862_s8 }
 0xb54   :  { %37 = sbr.rel (!%p35_p5) target bundleno = 17 (0x11), region = 159 }
 0xb59   :  { %1816 = vsyncpa [#allocation3], 1 }
 0xb5a   :  { %1818 = vsyncpa [#allocation3 + $0x1], 1 }
 0xb5b   :  { %1819 = vsyncpa [#allocation6], 1 }
 0xb5c   :  { %1820 = vsyncpa [#allocation4], 1 }
 0xb5d   :  { %1822 = vsyncpa [#allocation4 + $0x1], 1 }
 0xb5e   :  { %1823 = vsyncpa [#allocation9], 1 }
 0xb5f   :  { %1825 = vsyncpa [#allocation9 + $0x1], 1 }

</bundles_post_ra>
